<compile_context>
chip_gen: v7x
topology: tpu7x:2x2x1
jax: 0.10.0
libtpu: 0.0.40
codegen_flags: <defaults>
</compile_context>

<pallas_src>
import functools

import jax
import jax.numpy as jnp
from jax.experimental import pallas as pl
from jax.experimental.pallas import tpu as pltpu


def _mha_flash_kernel(num_heads, head_dim, scale,
                      xq_ref, xkv_ref,
                      wq_ref, bq_ref, wkv_ref, bkv_ref, wo_ref, bo_ref,
                      o_ref,
                      q_scr, m_scr, l_scr, acc_scr):
    """One grid step: (batch b, q-tile qi, kv-tile ki)."""
    qi = pl.program_id(1)
    ki = pl.program_id(2)
    nk = pl.num_programs(2)

    tq, D = xq_ref.shape
    tk = xkv_ref.shape[0]
    H, Hd = num_heads, head_dim

    # ---- per-(b, q-tile) init: project q once, reset online-softmax state --
    @pl.when(ki == 0)
    def _():
        q = jnp.dot(xq_ref[...], wq_ref[...],
                    preferred_element_type=jnp.float32) + bq_ref[0]        # (tq, D) f32
        q = (q * scale).astype(jnp.bfloat16)
        # Head-major layout (H, tq, Hd) so heads ride the einsum batch dim.
        q_scr[...] = jnp.transpose(q.reshape(tq, H, Hd), (1, 0, 2))
        m_scr[...] = jnp.full_like(m_scr, -1e30)
        l_scr[...] = jnp.zeros_like(l_scr)
        acc_scr[...] = jnp.zeros_like(acc_scr)

    # ---- flash update for this kv tile (skip fully-masked tiles) -----------
    needed = (ki * tk) <= (qi * tq + (tq - 1))

    @pl.when(needed)
    def _():
        # Fused K/V projection for this kv tile: one MXU pass with K = D.
        kv = jnp.dot(xkv_ref[...], wkv_ref[...],
                     preferred_element_type=jnp.float32) + bkv_ref[0]      # (tk, 2D) f32
        k = jnp.transpose(kv[:, :D].astype(jnp.bfloat16).reshape(tk, H, Hd),
                          (1, 0, 2))                                        # (H, tk, Hd)
        v = jnp.transpose(kv[:, D:].astype(jnp.bfloat16).reshape(tk, H, Hd),
                          (1, 0, 2))                                        # (H, tk, Hd)

        # All heads in one batched MXU op (heads = batch dim).
        s = jnp.einsum('hqd,hkd->hqk', q_scr[...], k,
                       preferred_element_type=jnp.float32)                  # (H, tq, tk)

        # Per-tile additive causal mask (finite; diagonal never masked).
        row = qi * tq + jax.lax.broadcasted_iota(jnp.int32, (tq, tk), 0)
        col = ki * tk + jax.lax.broadcasted_iota(jnp.int32, (tq, tk), 1)
        s = s + jnp.where(col > row, -1e30, 0.0).astype(jnp.float32)[None]

        m_prev = m_scr[...]                                                 # (H, tq, 1)
        m_new = jnp.maximum(m_prev, jnp.max(s, axis=-1, keepdims=True))
        alpha = jnp.exp(m_prev - m_new)
        p = jnp.exp(s - m_new)                                              # f32
        l_scr[...] = alpha * l_scr[...] + jnp.sum(p, axis=-1, keepdims=True)
        acc_scr[...] = alpha * acc_scr[...] + jnp.einsum(
            'hqk,hkd->hqd', p.astype(jnp.bfloat16), v,
            preferred_element_type=jnp.float32)                             # (H, tq, Hd)
        m_scr[...] = m_new
        # TODO(synk): nn.Dropout on attention weights is identity in eval mode.

    # ---- finalize: normalise, single K = D output projection ---------------
    @pl.when(ki == nk - 1)
    def _():
        ctx = acc_scr[...] * pl.reciprocal(l_scr[...], approx=True)         # (H, tq, Hd)
        ctx = jnp.transpose(ctx, (1, 0, 2)).reshape(tq, H * Hd)             # (tq, D)
        out = jnp.dot(ctx.astype(jnp.bfloat16), wo_ref[...],
                      preferred_element_type=jnp.float32) + bo_ref[0]
        o_ref[...] = out.astype(o_ref.dtype)


def multi_head_attention(x, params, *, num_heads, q_tile=None, kv_tile=None):
    """x: (B, T, D) float32.  params: (D, D) weights and (1, D) biases."""
    B, T, D = x.shape
    assert D % num_heads == 0
    head_dim = D // num_heads
    scale = 1.0 / (head_dim ** 0.5)

    # 256-row/col tiles feed the 256-wide MXU on v6e/v7x (128 on v5e); at the
    # toy context length everything is a single tile.
    tq = q_tile or min(T, 128)
    tk = kv_tile or min(T, 128)
    assert T % tq == 0 and T % tk == 0
    nq, nk = T // tq, T // tk

    # bf16 MXU operands; k/v weights fused so each kv tile needs one MXU pass.
    wq = params["wq"].astype(jnp.bfloat16)
    wkv = jnp.concatenate([params["wk"], params["wv"]], axis=1).astype(jnp.bfloat16)
    wo = params["wo"].astype(jnp.bfloat16)
    bq = params["bq"].astype(jnp.float32)
    bkv = jnp.concatenate([params["bk"], params["bv"]], axis=1).astype(jnp.float32)
    bo = params["bo"].astype(jnp.float32)

    # bf16 activations: halves the x HBM->VMEM DMA bytes.
    xb = x.astype(jnp.bfloat16)

    kernel = functools.partial(_mha_flash_kernel, num_heads, head_dim, scale)

    # Advisory cost estimate so XLA schedules around the custom call sensibly.
    flops = int(2 * B * T * D * D                       # q projection
                + 2 * B * T * (2 * D) * D * nq          # k/v projection (per q tile)
                + 4 * B * num_heads * T * T * head_dim  # scores + ctx
                + 2 * B * T * D * D)                    # output projection
    bytes_accessed = int(xb.size * 2 * 2                       # x read twice (q + kv)
                         + (wq.size + wkv.size + wo.size) * 2  # bf16 weights
                         + (bq.size + bkv.size + bo.size) * 4
                         + B * T * D * 4)                      # f32 output
    cost = pl.CostEstimate(flops=flops,
                           transcendentals=int(B * num_heads * T * T),
                           bytes_accessed=bytes_accessed)

    const = lambda b, qi, ki: (0, 0)
    out = pl.pallas_call(
        kernel,
        out_shape=jax.ShapeDtypeStruct((B, T, D), x.dtype),
        grid=(B, nq, nk),
        in_specs=[
            pl.BlockSpec((None, tq, D), lambda b, qi, ki: (b, qi, 0)),  # x -> q rows
            pl.BlockSpec((None, tk, D), lambda b, qi, ki: (b, ki, 0)),  # x -> kv rows
            pl.BlockSpec((D, D), const),          # W_q          (VMEM resident)
            pl.BlockSpec((1, D), const),          # b_q
            pl.BlockSpec((D, 2 * D), const),      # W_k | W_v fused
            pl.BlockSpec((1, 2 * D), const),      # b_k | b_v fused
            pl.BlockSpec((D, D), const),          # W_out
            pl.BlockSpec((1, D), const),          # b_out
        ],
        # NOTE: for D < 128 this is a lane-masked store; only matters below 128.
        out_specs=pl.BlockSpec((None, tq, D), lambda b, qi, ki: (b, qi, 0)),
        scratch_shapes=[
            pltpu.VMEM((num_heads, tq, head_dim), jnp.bfloat16),  # q (head-major)
            pltpu.VMEM((num_heads, tq, 1), jnp.float32),          # running max
            pltpu.VMEM((num_heads, tq, 1), jnp.float32),          # running denom
            pltpu.VMEM((num_heads, tq, head_dim), jnp.float32),   # ctx accumulator
        ],
        compiler_params=pltpu.CompilerParams(
            dimension_semantics=("parallel", "parallel", "arbitrary"),
            # Re-derive per generation / problem size (64 MiB physical on v7x).
            vmem_limit_bytes=32 * 1024 * 1024),
        cost_estimate=cost,
    )(xb, xb, wq, bq, wkv, bkv, wo, bo)
    return out


def _reference(x, params, num_heads):
    """Pure-JAX f32 reference mirroring the PyTorch forward pass."""
    B, T, D = x.shape
    head_dim = D // num_heads
    q = x @ params["wq"] + params["bq"][0]
    k = x @ params["wk"] + params["bk"][0]
    v = x @ params["wv"] + params["bv"][0]
    q = q.reshape(B, T, num_heads, head_dim).transpose(0, 2, 1, 3)
    k = k.reshape(B, T, num_heads, head_dim).transpose(0, 2, 1, 3)
    v = v.reshape(B, T, num_heads, head_dim).transpose(0, 2, 1, 3)
    scores = jnp.einsum("bhqd,bhkd->bhqk", q, k)
    mask = jnp.triu(jnp.ones((T, T), dtype=bool), k=1)
    scores = jnp.where(mask[None, None], -jnp.inf, scores)
    w = jax.nn.softmax(scores / (head_dim ** 0.5), axis=-1)
    ctx = jnp.einsum("bhqk,bhkd->bhqd", w, v).transpose(0, 2, 1, 3).reshape(B, T, D)
    return ctx @ params["wo"] + params["bo"][0]


if __name__ == "__main__":
    # config: embedding_dimension=32, num_attention_heads=4, context_length=8,
    #         qkv_bias=True, dropout_rate=0.0
    B, T, D, H = 2, 8, 32, 4

    key = jax.random.PRNGKey(0)
    keys = jax.random.split(key, 10)
    s = 0.05
    params = {
        "wq": s * jax.random.normal(keys[0], (D, D), jnp.float32),
        "bq": s * jax.random.normal(keys[1], (1, D), jnp.float32),
        "wk": s * jax.random.normal(keys[2], (D, D), jnp.float32),
        "bk": s * jax.random.normal(keys[3], (1, D), jnp.float32),
        "wv": s * jax.random.normal(keys[4], (D, D), jnp.float32),
        "bv": s * jax.random.normal(keys[5], (1, D), jnp.float32),
        "wo": s * jax.random.normal(keys[6], (D, D), jnp.float32),
        "bo": s * jax.random.normal(keys[7], (1, D), jnp.float32),
    }
    x = jax.random.normal(keys[8], (B, T, D), jnp.float32)

    out = multi_head_attention(x, params, num_heads=H)
    out = jax.block_until_ready(out)

    ref = _reference(x, params, H)
    assert out.shape == (B, T, D)
    # bf16 MXU operands (f32 accumulation / f32 softmax) + approx reciprocal
    # -> loosened tolerance; acceptable for inference.
    err = float(jnp.max(jnp.abs(out - ref)))
    assert jnp.allclose(out, ref, atol=2e-2, rtol=2e-2), f"max abs err={err}"

    print("KERNEL_OK")
</pallas_src>

<mosaic_0001>
module attributes {stable_mosaic.version = 11 : i64} {
  func.func @_mha_flash_kernel(%arg0: i32, %arg1: i32, %arg2: i32, %arg3: memref<1x8x32xbf16, #tpu.memory_space<vmem>>, %arg4: memref<1x8x32xbf16, #tpu.memory_space<vmem>>, %arg5: memref<32x32xbf16, #tpu.memory_space<vmem>>, %arg6: memref<1x32xf32, #tpu.memory_space<vmem>>, %arg7: memref<32x64xbf16, #tpu.memory_space<vmem>>, %arg8: memref<1x64xf32, #tpu.memory_space<vmem>>, %arg9: memref<32x32xbf16, #tpu.memory_space<vmem>>, %arg10: memref<1x32xf32, #tpu.memory_space<vmem>>, %arg11: memref<1x8x32xf32, #tpu.memory_space<vmem>>, %arg12: memref<4x8x8xbf16, #tpu.memory_space<vmem>>, %arg13: memref<4x8x1xf32, #tpu.memory_space<vmem>>, %arg14: memref<4x8x1xf32, #tpu.memory_space<vmem>>, %arg15: memref<4x8x8xf32, #tpu.memory_space<vmem>>) attributes {dimension_semantics = [#tpu.dimension_semantics<parallel>, #tpu.dimension_semantics<parallel>, #tpu.dimension_semantics<arbitrary>], iteration_bounds = array<i64: 2, 1, 1>, scalar_prefetch = 0 : i64, scratch_operands = 4 : i64, tpu.core_type = #tpu.core_type<tc>, window_params = [{transform_indices = @transform_0, window_bounds = array<i64: 1, 8, 32>}, {transform_indices = @transform_1, window_bounds = array<i64: 1, 8, 32>}, {pipeline_mode = #tpu.pipeline_mode<synchronous>, transform_indices = @transform_2, window_bounds = array<i64: 32, 32>}, {pipeline_mode = #tpu.pipeline_mode<synchronous>, transform_indices = @transform_3, window_bounds = array<i64: 1, 32>}, {pipeline_mode = #tpu.pipeline_mode<synchronous>, transform_indices = @transform_4, window_bounds = array<i64: 32, 64>}, {pipeline_mode = #tpu.pipeline_mode<synchronous>, transform_indices = @transform_5, window_bounds = array<i64: 1, 64>}, {pipeline_mode = #tpu.pipeline_mode<synchronous>, transform_indices = @transform_6, window_bounds = array<i64: 32, 32>}, {pipeline_mode = #tpu.pipeline_mode<synchronous>, transform_indices = @transform_7, window_bounds = array<i64: 1, 32>}, {transform_indices = @transform_8, window_bounds = array<i64: 1, 8, 32>}]} {
    %c0_i32 = arith.constant 0 : i32
    %0 = arith.cmpi eq, %arg2, %c0_i32 : i32
    %1 = arith.extui %0 : i1 to i32
    %c0_i32_0 = arith.constant 0 : i32
    %2 = arith.cmpi ne, %1, %c0_i32_0 : i32
    scf.if %2 {
      %c0 = arith.constant 0 : index
      %c0_5 = arith.constant 0 : index
      %c0_6 = arith.constant 0 : index
      %12 = vector.load %arg3[%c0, %c0_5, %c0_6] : memref<1x8x32xbf16, #tpu.memory_space<vmem>>, vector<1x8x32xbf16>
      %13 = vector.shape_cast %12 : vector<1x8x32xbf16> to vector<8x32xbf16>
      %c0_7 = arith.constant 0 : index
      %c0_8 = arith.constant 0 : index
      %14 = vector.load %arg5[%c0_7, %c0_8] : memref<32x32xbf16, #tpu.memory_space<vmem>>, vector<32x32xbf16>
      %cst = arith.constant dense<0.000000e+00> : vector<8x32xf32>
      %15 = tpu.matmul %13, %14, %cst {dimension_numbers = #tpu.dot_dimension_numbers<[1], [0], [0], [1], [0, 0, 1, 1], [], []>} : vector<8x32xbf16>, vector<32x32xbf16>, vector<8x32xf32> -> vector<8x32xf32>
      %c0_9 = arith.constant 0 : index
      %c0_10 = arith.constant 0 : index
      %16 = vector.load %arg6[%c0_9, %c0_10] : memref<1x32xf32, #tpu.memory_space<vmem>>, vector<1x32xf32>
      %17 = vector.shape_cast %16 : vector<1x32xf32> to vector<32xf32>
      %18 = vector.shape_cast %17 : vector<32xf32> to vector<1x32xf32>
      %19 = vector.broadcast %18 : vector<1x32xf32> to vector<8x32xf32>
      %20 = arith.addf %15, %19 : vector<8x32xf32>
      %cst_11 = arith.constant 0.353553385 : f32
      %21 = vector.broadcast %cst_11 : f32 to vector<8x32xf32>
      %22 = arith.mulf %20, %21 : vector<8x32xf32>
      %23 = arith.truncf %22 : vector<8x32xf32> to vector<8x32xbf16>
      %24 = vector.shape_cast %23 : vector<8x32xbf16> to vector<8x4x8xbf16>
      %25 = tpu.transpose %24, [1, 0, 2] : vector<8x4x8xbf16> -> vector<4x8x8xbf16>
      %c0_12 = arith.constant 0 : index
      %c0_13 = arith.constant 0 : index
      %c0_14 = arith.constant 0 : index
      %26 = vector.load %arg12[%c0_12, %c0_13, %c0_14] : memref<4x8x8xbf16, #tpu.memory_space<vmem>>, vector<4x8x8xbf16>
      tpu.vector_store %arg12[%c0_12, %c0_13, %c0_14], %25 {strides = array<i32>} : memref<4x8x8xbf16, #tpu.memory_space<vmem>>, vector<4x8x8xbf16>,
      %cst_15 = arith.constant -1.000000e+30 : f32
      %27 = vector.broadcast %cst_15 : f32 to vector<4x8x1xf32>
      %c0_16 = arith.constant 0 : index
      %c0_17 = arith.constant 0 : index
      %c0_18 = arith.constant 0 : index
      %28 = vector.load %arg13[%c0_16, %c0_17, %c0_18] : memref<4x8x1xf32, #tpu.memory_space<vmem>>, vector<4x8x1xf32>
      tpu.vector_store %arg13[%c0_16, %c0_17, %c0_18], %27 {strides = array<i32>} : memref<4x8x1xf32, #tpu.memory_space<vmem>>, vector<4x8x1xf32>,
      %cst_19 = arith.constant 0.000000e+00 : f32
      %29 = vector.broadcast %cst_19 : f32 to vector<4x8x1xf32>
      %c0_20 = arith.constant 0 : index
      %c0_21 = arith.constant 0 : index
      %c0_22 = arith.constant 0 : index
      %30 = vector.load %arg14[%c0_20, %c0_21, %c0_22] : memref<4x8x1xf32, #tpu.memory_space<vmem>>, vector<4x8x1xf32>
      tpu.vector_store %arg14[%c0_20, %c0_21, %c0_22], %29 {strides = array<i32>} : memref<4x8x1xf32, #tpu.memory_space<vmem>>, vector<4x8x1xf32>,
      %cst_23 = arith.constant 0.000000e+00 : f32
      %31 = vector.broadcast %cst_23 : f32 to vector<4x8x8xf32>
      %c0_24 = arith.constant 0 : index
      %c0_25 = arith.constant 0 : index
      %c0_26 = arith.constant 0 : index
      %32 = vector.load %arg15[%c0_24, %c0_25, %c0_26] : memref<4x8x8xf32, #tpu.memory_space<vmem>>, vector<4x8x8xf32>
      tpu.vector_store %arg15[%c0_24, %c0_25, %c0_26], %31 {strides = array<i32>} : memref<4x8x8xf32, #tpu.memory_space<vmem>>, vector<4x8x8xf32>,
    } else {
    }
    %c8_i32 = arith.constant 8 : i32
    %3 = arith.muli %arg2, %c8_i32 : i32
    %c8_i32_1 = arith.constant 8 : i32
    %4 = arith.muli %arg1, %c8_i32_1 : i32
    %c7_i32 = arith.constant 7 : i32
    %5 = arith.addi %4, %c7_i32 : i32
    %6 = arith.cmpi sle, %3, %5 : i32
    %7 = arith.extui %6 : i1 to i32
    %c0_i32_2 = arith.constant 0 : i32
    %8 = arith.cmpi ne, %7, %c0_i32_2 : i32
    scf.if %8 {
      %c0 = arith.constant 0 : index
      %c0_5 = arith.constant 0 : index
      %c0_6 = arith.constant 0 : index
      %12 = vector.load %arg4[%c0, %c0_5, %c0_6] : memref<1x8x32xbf16, #tpu.memory_space<vmem>>, vector<1x8x32xbf16>
      %13 = vector.shape_cast %12 : vector<1x8x32xbf16> to vector<8x32xbf16>
      %c0_7 = arith.constant 0 : index
      %c0_8 = arith.constant 0 : index
      %14 = vector.load %arg7[%c0_7, %c0_8] : memref<32x64xbf16, #tpu.memory_space<vmem>>, vector<32x64xbf16>
      %cst = arith.constant dense<0.000000e+00> : vector<8x64xf32>
      %15 = tpu.matmul %13, %14, %cst {dimension_numbers = #tpu.dot_dimension_numbers<[1], [0], [0], [1], [0, 0, 1, 1], [], []>} : vector<8x32xbf16>, vector<32x64xbf16>, vector<8x64xf32> -> vector<8x64xf32>
      %c0_9 = arith.constant 0 : index
      %c0_10 = arith.constant 0 : index
      %16 = vector.load %arg8[%c0_9, %c0_10] : memref<1x64xf32, #tpu.memory_space<vmem>>, vector<1x64xf32>
      %17 = vector.shape_cast %16 : vector<1x64xf32> to vector<64xf32>
      %18 = vector.shape_cast %17 : vector<64xf32> to vector<1x64xf32>
      %19 = vector.broadcast %18 : vector<1x64xf32> to vector<8x64xf32>
      %20 = arith.addf %15, %19 : vector<8x64xf32>
      %21 = vector.extract_strided_slice %20 {offsets = [0, 0], sizes = [8, 32], strides = [1, 1]} : vector<8x64xf32> to vector<8x32xf32>
      %22 = arith.truncf %21 : vector<8x32xf32> to vector<8x32xbf16>
      %23 = vector.shape_cast %22 : vector<8x32xbf16> to vector<8x4x8xbf16>
      %24 = tpu.transpose %23, [1, 0, 2] : vector<8x4x8xbf16> -> vector<4x8x8xbf16>
      %25 = vector.extract_strided_slice %20 {offsets = [0, 32], sizes = [8, 32], strides = [1, 1]} : vector<8x64xf32> to vector<8x32xf32>
      %26 = arith.truncf %25 : vector<8x32xf32> to vector<8x32xbf16>
      %27 = vector.shape_cast %26 : vector<8x32xbf16> to vector<8x4x8xbf16>
      %28 = tpu.transpose %27, [1, 0, 2] : vector<8x4x8xbf16> -> vector<4x8x8xbf16>
      %c0_11 = arith.constant 0 : index
      %c0_12 = arith.constant 0 : index
      %c0_13 = arith.constant 0 : index
      %29 = vector.load %arg12[%c0_11, %c0_12, %c0_13] : memref<4x8x8xbf16, #tpu.memory_space<vmem>>, vector<4x8x8xbf16>
      "tpu.trace_start"() <{level = 10 : i32, message = "hqd,hkd->hqk"}> : () -> ()
      %cst_14 = arith.constant dense<0.000000e+00> : vector<4x8x8xf32>
      %30 = tpu.matmul %29, %24, %cst_14 {dimension_numbers = #tpu.dot_dimension_numbers<[2], [2], [1], [1], [0, 0, 0, 1, 1, 1], [0], [0]>} : vector<4x8x8xbf16>, vector<4x8x8xbf16>, vector<4x8x8xf32> -> vector<4x8x8xf32>
      "tpu.trace_stop"() : () -> ()
      %c8_i32_15 = arith.constant 8 : i32
      %31 = arith.muli %arg1, %c8_i32_15 : i32
      %32 = tpu.iota {dimensions = array<i32: 0>} : vector<8x8xi32>
      %33 = vector.broadcast %31 : i32 to vector<8x8xi32>
      %34 = arith.addi %33, %32 : vector<8x8xi32>
      %c8_i32_16 = arith.constant 8 : i32
      %35 = arith.muli %arg2, %c8_i32_16 : i32
      %36 = tpu.iota {dimensions = array<i32: 1>} : vector<8x8xi32>
      %37 = vector.broadcast %35 : i32 to vector<8x8xi32>
      %38 = arith.addi %37, %36 : vector<8x8xi32>
      %39 = arith.cmpi sgt, %38, %34 : vector<8x8xi32>
      %cst_17 = arith.constant -1.000000e+30 : f32
      %cst_18 = arith.constant 0.000000e+00 : f32
      %40 = vector.broadcast %cst_17 : f32 to vector<8x8xf32>
      %41 = vector.broadcast %cst_18 : f32 to vector<8x8xf32>
      %42 = arith.select %39, %40, %41 : vector<8x8xi1>, vector<8x8xf32>
      %43 = vector.shape_cast %42 : vector<8x8xf32> to vector<1x8x8xf32>
      %44 = vector.broadcast %43 : vector<1x8x8xf32> to vector<4x8x8xf32>
      %45 = arith.addf %30, %44 : vector<4x8x8xf32>
      %c0_19 = arith.constant 0 : index
      %c0_20 = arith.constant 0 : index
      %c0_21 = arith.constant 0 : index
      %46 = vector.load %arg13[%c0_19, %c0_20, %c0_21] : memref<4x8x1xf32, #tpu.memory_space<vmem>>, vector<4x8x1xf32>
      %cst_22 = arith.constant dense<0xFF800000> : vector<4x8xf32>
      %47 = vector.multi_reduction <maximumf>, %45, %cst_22 [2] : vector<4x8x8xf32> to vector<4x8xf32>
      %48 = vector.shape_cast %47 : vector<4x8xf32> to vector<4x8x1xf32>
      %49 = arith.maximumf %46, %48 : vector<4x8x1xf32>
      %50 = arith.subf %46, %49 : vector<4x8x1xf32>
      %51 = math.exp %50 : vector<4x8x1xf32>
      %52 = vector.broadcast %49 : vector<4x8x1xf32> to vector<4x8x8xf32>
      %53 = arith.subf %45, %52 : vector<4x8x8xf32>
      %54 = math.exp %53 : vector<4x8x8xf32>
      %c0_23 = arith.constant 0 : index
      %c0_24 = arith.constant 0 : index
      %c0_25 = arith.constant 0 : index
      %55 = vector.load %arg14[%c0_23, %c0_24, %c0_25] : memref<4x8x1xf32, #tpu.memory_space<vmem>>, vector<4x8x1xf32>
      %56 = arith.mulf %51, %55 : vector<4x8x1xf32>
      %cst_26 = arith.constant dense<0.000000e+00> : vector<4x8xf32>
      %57 = vector.multi_reduction <add>, %54, %cst_26 [2] : vector<4x8x8xf32> to vector<4x8xf32>
      %58 = vector.shape_cast %57 : vector<4x8xf32> to vector<4x8x1xf32>
      %59 = arith.addf %56, %58 : vector<4x8x1xf32>
      %c0_27 = arith.constant 0 : index
      %c0_28 = arith.constant 0 : index
      %c0_29 = arith.constant 0 : index
      %60 = vector.load %arg14[%c0_27, %c0_28, %c0_29] : memref<4x8x1xf32, #tpu.memory_space<vmem>>, vector<4x8x1xf32>
      tpu.vector_store %arg14[%c0_27, %c0_28, %c0_29], %59 {strides = array<i32>} : memref<4x8x1xf32, #tpu.memory_space<vmem>>, vector<4x8x1xf32>,
      %c0_30 = arith.constant 0 : index
      %c0_31 = arith.constant 0 : index
      %c0_32 = arith.constant 0 : index
      %61 = vector.load %arg15[%c0_30, %c0_31, %c0_32] : memref<4x8x8xf32, #tpu.memory_space<vmem>>, vector<4x8x8xf32>
      %62 = vector.broadcast %51 : vector<4x8x1xf32> to vector<4x8x8xf32>
      %63 = arith.mulf %62, %61 : vector<4x8x8xf32>
      %64 = arith.truncf %54 : vector<4x8x8xf32> to vector<4x8x8xbf16>
      "tpu.trace_start"() <{level = 10 : i32, message = "hqk,hkd->hqd"}> : () -> ()
      %cst_33 = arith.constant dense<0.000000e+00> : vector<4x8x8xf32>
      %65 = tpu.matmul %64, %28, %cst_33 {dimension_numbers = #tpu.dot_dimension_numbers<[2], [1], [1], [2], [0, 0, 0, 1, 1, 2], [0], [0]>} : vector<4x8x8xbf16>, vector<4x8x8xbf16>, vector<4x8x8xf32> -> vector<4x8x8xf32>
      "tpu.trace_stop"() : () -> ()
      %66 = arith.addf %63, %65 : vector<4x8x8xf32>
      %c0_34 = arith.constant 0 : index
      %c0_35 = arith.constant 0 : index
      %c0_36 = arith.constant 0 : index
      %67 = vector.load %arg15[%c0_34, %c0_35, %c0_36] : memref<4x8x8xf32, #tpu.memory_space<vmem>>, vector<4x8x8xf32>
      tpu.vector_store %arg15[%c0_34, %c0_35, %c0_36], %66 {strides = array<i32>} : memref<4x8x8xf32, #tpu.memory_space<vmem>>, vector<4x8x8xf32>,
      %c0_37 = arith.constant 0 : index
      %c0_38 = arith.constant 0 : index
      %c0_39 = arith.constant 0 : index
      %68 = vector.load %arg13[%c0_37, %c0_38, %c0_39] : memref<4x8x1xf32, #tpu.memory_space<vmem>>, vector<4x8x1xf32>
      tpu.vector_store %arg13[%c0_37, %c0_38, %c0_39], %49 {strides = array<i32>} : memref<4x8x1xf32, #tpu.memory_space<vmem>>, vector<4x8x1xf32>,
    } else {
    }
    %c0_i32_3 = arith.constant 0 : i32
    %9 = arith.cmpi eq, %arg2, %c0_i32_3 : i32
    %10 = arith.extui %9 : i1 to i32
    %c0_i32_4 = arith.constant 0 : i32
    %11 = arith.cmpi ne, %10, %c0_i32_4 : i32
    scf.if %11 {
      %c0 = arith.constant 0 : index
      %c0_5 = arith.constant 0 : index
      %c0_6 = arith.constant 0 : index
      %12 = vector.load %arg15[%c0, %c0_5, %c0_6] : memref<4x8x8xf32, #tpu.memory_space<vmem>>, vector<4x8x8xf32>
      %c0_7 = arith.constant 0 : index
      %c0_8 = arith.constant 0 : index
      %c0_9 = arith.constant 0 : index
      %13 = vector.load %arg14[%c0_7, %c0_8, %c0_9] : memref<4x8x1xf32, #tpu.memory_space<vmem>>, vector<4x8x1xf32>
      %14 = tpu.reciprocal %13 {approx = true} : vector<4x8x1xf32> -> vector<4x8x1xf32>
      %15 = vector.broadcast %14 : vector<4x8x1xf32> to vector<4x8x8xf32>
      %16 = arith.mulf %12, %15 : vector<4x8x8xf32>
      %17 = tpu.transpose %16, [1, 0, 2] : vector<4x8x8xf32> -> vector<8x4x8xf32>
      %18 = vector.shape_cast %17 : vector<8x4x8xf32> to vector<8x32xf32>
      %19 = arith.truncf %18 : vector<8x32xf32> to vector<8x32xbf16>
      %c0_10 = arith.constant 0 : index
      %c0_11 = arith.constant 0 : index
      %20 = vector.load %arg9[%c0_10, %c0_11] : memref<32x32xbf16, #tpu.memory_space<vmem>>, vector<32x32xbf16>
      %cst = arith.constant dense<0.000000e+00> : vector<8x32xf32>
      %21 = tpu.matmul %19, %20, %cst {dimension_numbers = #tpu.dot_dimension_numbers<[1], [0], [0], [1], [0, 0, 1, 1], [], []>} : vector<8x32xbf16>, vector<32x32xbf16>, vector<8x32xf32> -> vector<8x32xf32>
      %c0_12 = arith.constant 0 : index
      %c0_13 = arith.constant 0 : index
      %22 = vector.load %arg10[%c0_12, %c0_13] : memref<1x32xf32, #tpu.memory_space<vmem>>, vector<1x32xf32>
      %23 = vector.shape_cast %22 : vector<1x32xf32> to vector<32xf32>
      %24 = vector.shape_cast %23 : vector<32xf32> to vector<1x32xf32>
      %25 = vector.broadcast %24 : vector<1x32xf32> to vector<8x32xf32>
      %26 = arith.addf %21, %25 : vector<8x32xf32>
      %c0_14 = arith.constant 0 : index
      %c0_15 = arith.constant 0 : index
      %c0_16 = arith.constant 0 : index
      %27 = vector.load %arg11[%c0_14, %c0_15, %c0_16] : memref<1x8x32xf32, #tpu.memory_space<vmem>>, vector<1x8x32xf32>
      %28 = vector.shape_cast %27 : vector<1x8x32xf32> to vector<8x32xf32>
      %29 = vector.shape_cast %26 : vector<8x32xf32> to vector<1x8x32xf32>
      tpu.vector_store %arg11[%c0_14, %c0_15, %c0_16], %29 {strides = array<i32>} : memref<1x8x32xf32, #tpu.memory_space<vmem>>, vector<1x8x32xf32>,
    } else {
    }
    return
  }
  func.func @transform_0(%arg0: i32, %arg1: i32, %arg2: i32) -> (i32, i32, i32) {
    %c0_i32 = arith.constant 0 : i32
    %c0_i32_0 = arith.constant 0 : i32
    return %arg0, %arg1, %c0_i32 : i32, i32, i32
  }
  func.func @transform_1(%arg0: i32, %arg1: i32, %arg2: i32) -> (i32, i32, i32) {
    %c0_i32 = arith.constant 0 : i32
    %c0_i32_0 = arith.constant 0 : i32
    return %arg0, %arg2, %c0_i32 : i32, i32, i32
  }
  func.func @transform_2(%arg0: i32, %arg1: i32, %arg2: i32) -> (i32, i32) {
    %c0_i32 = arith.constant 0 : i32
    %c0_i32_0 = arith.constant 0 : i32
    %c0_i32_1 = arith.constant 0 : i32
    return %c0_i32, %c0_i32_0 : i32, i32
  }
  func.func @transform_3(%arg0: i32, %arg1: i32, %arg2: i32) -> (i32, i32) {
    %c0_i32 = arith.constant 0 : i32
    %c0_i32_0 = arith.constant 0 : i32
    %c0_i32_1 = arith.constant 0 : i32
    return %c0_i32, %c0_i32_0 : i32, i32
  }
  func.func @transform_4(%arg0: i32, %arg1: i32, %arg2: i32) -> (i32, i32) {
    %c0_i32 = arith.constant 0 : i32
    %c0_i32_0 = arith.constant 0 : i32
    %c0_i32_1 = arith.constant 0 : i32
    return %c0_i32, %c0_i32_0 : i32, i32
  }
  func.func @transform_5(%arg0: i32, %arg1: i32, %arg2: i32) -> (i32, i32) {
    %c0_i32 = arith.constant 0 : i32
    %c0_i32_0 = arith.constant 0 : i32
    %c0_i32_1 = arith.constant 0 : i32
    return %c0_i32, %c0_i32_0 : i32, i32
  }
  func.func @transform_6(%arg0: i32, %arg1: i32, %arg2: i32) -> (i32, i32) {
    %c0_i32 = arith.constant 0 : i32
    %c0_i32_0 = arith.constant 0 : i32
    %c0_i32_1 = arith.constant 0 : i32
    return %c0_i32, %c0_i32_0 : i32, i32
  }
  func.func @transform_7(%arg0: i32, %arg1: i32, %arg2: i32) -> (i32, i32) {
    %c0_i32 = arith.constant 0 : i32
    %c0_i32_0 = arith.constant 0 : i32
    %c0_i32_1 = arith.constant 0 : i32
    return %c0_i32, %c0_i32_0 : i32, i32
  }
  func.func @transform_8(%arg0: i32, %arg1: i32, %arg2: i32) -> (i32, i32, i32) {
    %c0_i32 = arith.constant 0 : i32
    %c0_i32_0 = arith.constant 0 : i32
    return %arg0, %arg1, %c0_i32 : i32, i32, i32
  }
}

</mosaic_0001>

<bundles_post_ra>
// kernel: tpu_custom_call.1
= control target key start
LH: loop header
LB: loop body
LE: loop exit
PB: predicated region body
PF: predicated region fallthrough
CT: control target
= control target key end

     0   :  { %s3143_s0 = inlined_call_operand.hbm [shape: bf16[2,8,32], index: 0, kind: input, shape index: {}]   ;;  %s3144_s1 = inlined_call_operand.hbm [shape: bf16[2,8,32], index: 1, kind: input, shape index: {}]   ;;  %s3145_s2 = inlined_call_operand.hbm [shape: bf16[32,32], index: 2, kind: input, shape index: {}]   ;;  %s3146_s3 = inlined_call_operand.vmem [shape: f32[1,32], index: 3, kind: input, shape index: {}]   ;;  %s3147_s4 = inlined_call_operand.hbm [shape: bf16[32,64], index: 4, kind: input, shape index: {}]   ;;  %s3148_s5 = inlined_call_operand.vmem [shape: f32[1,64], index: 5, kind: input, shape index: {}]   ;;  %s3149_s6 = inlined_call_operand.vmem [shape: bf16[32,32], index: 6, kind: input, shape index: {}]   ;;  %s3150_s7 = inlined_call_operand.vmem [shape: f32[1,32], index: 7, kind: input, shape index: {}]   ;;  %s3151_s8 = inlined_call_operand.hbm [shape: f32[2,8,32], index: 8, kind: output, shape index: {}]  }
   0x1   :  { %3160 = sst [smem:[#allocation25_spill]] %s3145_s2 }
   0x2   :  { %3161 = sst [smem:[#allocation26_spill]] %s3147_s4 }
   0x3   :  { %13 = vsyncpa [#allocation7], 0 }
   0x4   :  { %15 = vsyncpa [#allocation7 + $0x1], 0 }
   0x5   :  { %16 = vsyncpa [#allocation10], 0 }
   0x6   :  { %18 = vsyncpa [#allocation10 + $0x1], 0 }
   0x7   :  { %19 = vsyncpa [#allocation13], 0 }
   0x8   :  { %20 = vsyncpa [#allocation8], 0 }
   0x9   :  { %22 = vsyncpa [#allocation8 + $0x1], 0  ;;  %s2569_s27 = smov 0   ;;  %s2571_s28 = smov 0  }
   0xa   :  { %s2573_s29 = smov 0   ;;  %s2575_s30 = smov 0  }
   0xb   :  { %s2577_s9 = smov 0   ;;  %s2579_s10 = smov 0  }
   0xc LB: > { %3162 = sst [smem:[#allocation20_spill]] %s2482_s27  ;;  %s2600_s11 = sadd.s32 4294967295, %s2502_s10   ;;  %s2502_s10 = sphi %s2579_s10, %s28_s10   ;;  %s2498_s9 = sphi %s2577_s9, %s3189_s9   ;;  %s2494_s30 = sphi %s2575_s30, %s3188_s30   ;;  %s2490_s29 = sphi %s2573_s29, %s3192_s29   ;;  %s2486_s28 = sphi %s2571_s28, %s3191_s28   ;;  %s2482_s27 = sphi %s2569_s27, %s3190_s27  }
   0xd   : > { %3163 = sst [smem:[#allocation21_spill]] %s2498_s9  ;;  %s2019_s12 = sadd.s32 4294967294, %s2502_s10  }
   0xe   : > { %p69_p0 = scmp.ne.s32.totalorder %s2486_s28, %s2482_s27  ;;  %p3152_p1 = scmp.eq.s32.totalorder %s2600_s11, 0 }
   0xf   : > { %p255_p3 = scmp.eq.s32.totalorder %s2019_s12, 1  ;;  %p2020_p5 = scmp.ge.s32.totalorder %s2502_s10, 1 }
  0x10   : > { %p2609_p4 = por %p3152_p1, %p69_p0  ;;  %p262_p7 = scmp.lt.s32.totalorder %s2502_s10, 3 }
  0x11   : > { %p2614_p6 = por %p255_p3, %p69_p0  ;;  %s2504_s16 = smov [#allocation11]  }
  0x12   : > { %s3164_s13 = scalar_select %p2609_p4, 1, 0 }
  0x13   : > { %s3165_s14 = scalar_select %p2614_p6, 1, 0 }
  0x14   : > { %p2619_p8 = pnand %p2020_p5, %p262_p7  ;;  %s274_s17 = sshll.u32 %s2504_s16, 4  ;;  %s2623_s17 = int_to_ptr.vmem [resolvable:$true] %s274_s17 }
  0x15   : > { %3166 = sst [smem:[#allocation22_spill]] %s3165_s14  ;;  %s2505_s19 = smov [#allocation12]  }
  0x16   : > { %s3167_s15 = scalar_select %p2619_p8, 1, 0 }
  0x17   : > { %p2171_p9 = pneg %p2619_p8  ;;  %s290_s20 = sshll.u32 %s2505_s19, 4  ;;  %s2634_s20 = int_to_ptr.vmem [resolvable:$true] %s290_s20 }
  0x18   : > { %s3169_s2 = sld [smem:[#allocation25_spill]] }
  0x19   : > { %p2630_p11 = pnand %p2171_p9, %p3152_p1 }
  0x1b   : > { %p2294_p13 = pneg %p2630_p11 }
  0x1e   : > { %s2292_s23 = scalar_lea.hbm %s3169_s2, 256 }
  0x1f   : > { %p2293_p12 = scmp.ne.s32.totalorder %s3169_s2, %s2292_s23  ;;  %p2299_p5 = scmp.lt.u32.totalorder %s2292_s23, %s3169_s2 }
  0x21   : > { %p2295_p0 = pnand %p2294_p13, %p2293_p12 }
  0x23   : > { %p2296_p3 = pneg %p2295_p0 }
  0x25   : > { %p2301_p7 = pnand %p2299_p5, %p2296_p3 }
  0x27   : > { %2304 = shalt.err (!%p2301_p7)
}
  0x28   : > { %s2305_s16 = scalar_lea.vmem %s2623_s17, 256  ;;  %p2313_p2 = scmp.lt.s32.totalorder %s2623_s17, %s2623_s17 }
  0x29   : > { %p2306_p9 = scmp.ne.s32.totalorder %s2623_s17, %s2305_s16  ;;  %p2314_p12 = scmp.lt.s32.totalorder %s2305_s16, %s2305_s16 }
  0x2b   : > { %p2308_p10 = pnand %p2306_p9, %p2294_p13  ;;  %p2315_p0 = por %p2314_p12, %p2313_p2 }
  0x2d   : > { %p2309_p1 = pneg %p2308_p10 }
  0x2f   : > { %p2316_p6 = pnand %p2315_p0, %p2309_p1 }
  0x31   : > { %2319 = shalt.err (!%p2316_p6)
}
  0x32   : > { %s2506_s19 = smov 64   ;;  %s2507_s21 = smov 4  }
  0x33   : > { %2174 = dma.hbm_to_vmem [thread:$0]  (!%p2630_p11), %s3169_s2, 256, %s2623_s17, [#allocation10], %s2506_s19, %s2506_s19, %s2507_s21  }
  0x34   : > { %s3170_s4 = sld [smem:[#allocation26_spill]] }
  0x3a   : > { %s2320_s26 = scalar_lea.hbm %s3170_s4, 256 }
  0x3b   : > { %p2321_p2 = scmp.ne.s32.totalorder %s3170_s4, %s2320_s26  ;;  %p2327_p10 = scmp.lt.u32.totalorder %s2320_s26, %s3170_s4 }
  0x3d   : > { %p2323_p1 = pnand %p2321_p2, %p2294_p13 }
  0x3f   : > { %p2324_p6 = pneg %p2323_p1 }
  0x41   : > { %p2329_p3 = pnand %p2327_p10, %p2324_p6 }
  0x43   : > { %2332 = shalt.err (!%p2329_p3)
}
  0x44   : > { %s2333_s17 = scalar_lea.vmem %s2634_s20, 256  ;;  %p2341_p12 = scmp.lt.s32.totalorder %s2634_s20, %s2634_s20 }
  0x45   : > { %p2334_p5 = scmp.ne.s32.totalorder %s2634_s20, %s2333_s17  ;;  %p2342_p0 = scmp.lt.s32.totalorder %s2333_s17, %s2333_s17 }
  0x47   : > { %p2336_p7 = pnand %p2334_p5, %p2294_p13  ;;  %p2343_p2 = por %p2342_p0, %p2341_p12 }
  0x49   : > { %p2337_p9 = pneg %p2336_p7 }
  0x4b   : > { %p2344_p1 = pnand %p2343_p2, %p2337_p9 }
  0x4d   : > { %2347 = shalt.err (!%p2344_p1)
}
  0x4e   : > { %2177 = dma.hbm_to_vmem [thread:$0]  (!%p2630_p11), %s3170_s4, 256, %s2634_s20, [#allocation13], %s2506_s19, %s2506_s19, %s2507_s21  }
  0x4f   : > { %s47_s22 = sadd.s32 1, %s2498_s9  ;;  %s56_s23 = sadd.s32 1, %s2490_s29 }
  0x50   : > { %p49_p13 = scmp.ge.s32.totalorder %s47_s22, 2  ;;  %p63_p6 = scmp.ne.s32.totalorder %s2490_s29, %s2486_s28 }
  0x51   : > { %p64_p10 = scmp.eq.s32.totalorder %s2502_s10, 0  ;;  %p2191_p3 = scmp.lt.s32.totalorder %s2502_s10, 2 }
  0x52   : > { %s3194_s22 = smov (%p49_p13, %s47_s22), 0  ;;  %p3172_p7 = scmp.eq.s32.totalorder %s2600_s11, 1 }
  0x53   : > { %3171 = sst [smem:[#allocation23_spill]] %s3194_s22  ;;  %p65_p5 = por %p64_p10, %p63_p6 }
  0x54   : > { %p2698_p9 = por %p3172_p7, %p63_p6  ;;  %s51_s24 = ssub.s32 %s2498_s9, %s3194_s22 }
  0x55   : > { %s313_s25 = sand.u32 1, %s2490_s29   ;;  %p54_p12 = scmp.eq.s32.totalorder %s51_s24, 0 }
  0x56   : > { %s3173_s18 = scalar_select %p2698_p9, 1, 0 }
  0x57   : > { %s2705_s20 = sshll.u32 %s313_s25, 2  ;;  %s2025_s19 = sshll.u32 %s2498_s9, 6 }
  0x58   : > { %s2709_s21 = scalar_select %p54_p12, %s2490_s29, %s56_s23  }
  0x59   : > { %s2714_s16 = scalar_lea.hbm %s3143_s0, %s2025_s19  ;;  %s317_s17 = scalar_lea.vmem [#allocation6], %s2705_s20 }
  0x5a   : > { %3174 = sst [smem:[#allocation24_spill]] %s2709_s21  ;;  %s325_s27 = sshll.u32 %s317_s17, 4  ;;  %s2723_s27 = int_to_ptr.vmem [resolvable:$true] %s325_s27 }
  0x5b   : > { %p2719_p11 = pnand %p2191_p3, %p65_p5  ;;  %s2728_s26 = scalar_lea.hbm %s3144_s1, %s2025_s19 }
  0x5c   : > { %s314_s12 = scalar_lea.sflag [#allocation7], %s313_s25  ;;  %s2348_s2 = scalar_lea.hbm %s2714_s16, 64 }
  0x5d   : > { %p2349_p0 = scmp.ne.s32.totalorder %s2714_s16, %s2348_s2  ;;  %p2350_p2 = pneg %p2719_p11 }
  0x5e   : > { %s2353_s22 = scalar_lea.hbm %s3143_s0, 128  ;;  %p2354_p6 = scmp.lt.u32.totalorder %s2714_s16, %s3143_s0 }
  0x5f   : > { %p2351_p1 = pnand %p2350_p2, %p2349_p0  ;;  %p2355_p10 = scmp.lt.u32.totalorder %s2353_s22, %s2348_s2 }
  0x60   : > { %p2357_p5 = scmp.lt.u32.totalorder %s2348_s2, %s2714_s16 }
  0x61   : > { %p2352_p13 = pneg %p2351_p1  ;;  %p2356_p3 = por %p2355_p10, %p2354_p6 }
  0x63   : > { %p2358_p7 = por %p2357_p5, %p2356_p3 }
  0x65   : > { %p2359_p12 = pnand %p2358_p7, %p2352_p13 }
  0x67   : > { %2362 = shalt.err (!%p2359_p12)
}
  0x68   : > { %s2363_s25 = scalar_lea.vmem %s2723_s27, 64  ;;  %s2508_s4 = smov [#allocation6]  }
  0x69   : > { %p2364_p0 = scmp.ne.s32.totalorder %s2723_s27, %s2363_s25  ;;  %s2368_s19 = sshll.u32 %s2508_s4, 4  ;;  %s2369_s19 = int_to_ptr.vmem [resolvable:$false] %s2368_s19 }
  0x6a   : > { %s2370_s9 = scalar_lea.vmem %s2369_s19, 128  ;;  %p2371_p4 = scmp.lt.s32.totalorder %s2723_s27, %s2369_s19 }
  0x6b   : > { %p2366_p1 = pnand %p2364_p0, %p2350_p2  ;;  %p2372_p6 = scmp.lt.s32.totalorder %s2370_s9, %s2363_s25 }
  0x6d   : > { %p2367_p9 = pneg %p2366_p1  ;;  %p2373_p10 = por %p2372_p6, %p2371_p4 }
  0x6f   : > { %p2374_p3 = pnand %p2373_p10, %p2367_p9 }
  0x71   : > { %2377 = shalt.err (!%p2374_p3)
}
  0x72   : > { %2181 = dma.hbm_to_vmem [thread:$0]  (!%p2719_p11), %s2714_s16, 64, %s2723_s27, %s314_s12  }
  0x73   : > { %s332_s2 = sand.u32 1, %s2502_s10   ;;  %s336_s22 = scalar_lea.vmem [#allocation9], %s2705_s20 }
  0x74   : > { %s344_s21 = sshll.u32 %s336_s22, 4  ;;  %s333_s23 = scalar_lea.sflag [#allocation10], %s332_s2  ;;  %s345_s21 = int_to_ptr.vmem [resolvable:$true] %s344_s21 }
  0x75   : > { %s2378_s24 = scalar_lea.hbm %s2728_s26, 64  ;;  %s2383_s4 = scalar_lea.hbm %s3144_s1, 128 }
  0x76   : > { %p2379_p4 = scmp.ne.s32.totalorder %s2728_s26, %s2378_s24  ;;  %p2384_p5 = scmp.lt.u32.totalorder %s2728_s26, %s3144_s1 }
  0x77   : > { %p2385_p7 = scmp.lt.u32.totalorder %s2383_s4, %s2378_s24  ;;  %p2387_p0 = scmp.lt.u32.totalorder %s2378_s24, %s2728_s26 }
  0x78   : > { %p2381_p9 = pnand %p2379_p4, %p2350_p2 }
  0x79   : > { %p2386_p12 = por %p2385_p7, %p2384_p5 }
  0x7a   : > { %p2382_p13 = pneg %p2381_p9 }
  0x7b   : > { %p2388_p1 = por %p2387_p0, %p2386_p12 }
  0x7d   : > { %p2389_p6 = pnand %p2388_p1, %p2382_p13 }
  0x7f   : > { %2392 = shalt.err (!%p2389_p6)
}
  0x80   : > { %s2393_s20 = scalar_lea.vmem %s345_s21, 64  ;;  %s2509_s16 = smov [#allocation9]  }
  0x81   : > { %p2394_p10 = scmp.ne.s32.totalorder %s345_s21, %s2393_s20  ;;  %s2398_s27 = sshll.u32 %s2509_s16, 4  ;;  %s2399_s27 = int_to_ptr.vmem [resolvable:$false] %s2398_s27 }
  0x82   : > { %s2400_s12 = scalar_lea.vmem %s2399_s27, 128  ;;  %p2401_p9 = scmp.lt.s32.totalorder %s345_s21, %s2399_s27 }
  0x83   : > { %p2396_p3 = pnand %p2394_p10, %p2350_p2  ;;  %p2402_p8 = scmp.lt.s32.totalorder %s2400_s12, %s2393_s20 }
  0x85   : > { %p2397_p4 = pneg %p2396_p3  ;;  %p2403_p5 = por %p2402_p8, %p2401_p9 }
  0x87   : > { %p2404_p7 = pnand %p2403_p5, %p2397_p4 }
  0x89   : > { %2407 = shalt.err (!%p2404_p7)
}
  0x8a   : > { %2184 = dma.hbm_to_vmem [thread:$0]  (!%p2719_p11), %s2728_s26, 64, %s345_s21, %s333_s23  }
  0x8b   : > { %p3176_p13 = scmp.ne.s32.totalorder %s3167_s15, 0 }
  0x8c   : > { %s2779_s2 = sand.u32 (!%p3176_p13), 1, %s2486_s28   ;;  %p3177_p2 = scmp.ne.s32.totalorder (!%p3176_p13), %s3164_s13, 0 }
  0x8d   : > { %353 = sbr.rel (%p3176_p13) target bundleno = 1721 (0x6b9), region = 52  ;;  %s2029_s22 = sshll.u32 (!%p3176_p13), %s2779_s2, 2 }
  0x8e   : > { %s356_s24 = scalar_lea.sflag (!%p3176_p13), [#allocation7], %s2779_s2  ;;  %s359_s17 = scalar_lea.vmem (!%p3176_p13), [#allocation6], %s2029_s22 }
  0x94   : > { %2461 = dma.done.wait (%p3177_p2), %s356_s24, 64  }
  0x95   : > { %2463 = vsyncadd (%p3177_p2), %s356_s24, 4294967232  ;;  %s364_s14 = sand.u32 1, %s2600_s11   ;;  %s368_s15 = scalar_lea.vmem [#allocation9], %s2029_s22 }
  0x96   : > { %s365_s26 = scalar_lea.sflag [#allocation10], %s364_s14 }
  0x97   : > { %2465 = dma.done.wait (%p3177_p2), %s365_s26, 64  }
  0x98   : > { %2467 = vsyncadd (%p3177_p2), %s365_s26, 4294967232  ;;  %p3178_p8 = scmp.eq.s32.totalorder %s2600_s11, 0 }
  0x9a   : > { %2469 = dma.done.wait (%p3178_p8), [#allocation10], 256   ;;  %p3179_p11 = pmov %p3178_p8 }
  0x9b   : > { %p3180_p12 = pmov %p3178_p8 }
  0x9c   : > { %2471 = vsyncadd (%p3179_p11), [#allocation10], 4294967040 }
  0x9d   : > { %2473 = dma.done.wait (%p3180_p12), [#allocation13], 256   ;;  %p3181_p0 = pmov %p3178_p8 }
  0x9e   : > { %v2510_v0 = vmov 0.0   ;;  %vm2511_vm0 = vmmov 0   ;;  %v2262_v1 = vld [vmem:[#allocation11] sm:$0xff]   ;;  %v2263_v2 = vld [vmem:[#allocation12] sm:$0xff]   ;;  %v2264_v3 = vld [vmem:[#allocation11 + $0x8] sm:$0xff]   ;;  %vm443_vm1 = vcmask 261120   ;;  %v499_v25 = vlaneseq }
  0x9f   : > { %2475 = vsyncadd (%p3181_p0), [#allocation13], 4294967040  ;;  %2085 = vmatprep.subr.bf16.mxu0 %v2510_v0  ;;  %2093 = vmatprep.subr.bf16.mxu1 %v2510_v0  ;;  %v2265_v4 = vld [vmem:[#allocation12 + $0x8] sm:$0xff]   ;;  %v419_v5 = vld [vmem:[%s359_s17] sm:$0xf]  ;;  %v2512_v7 = vmov 0  }
  0xa0   : > { %2089 = vmatprep.mubr.msk.bf16.mxu0 %vm2511_vm0, %v2510_v0  ;;  %2097 = vmatprep.mubr.msk.bf16.mxu1 %vm2511_vm0, %v2510_v0  ;;  %v687_v6 = vld [vmem:[%s368_s15] sm:$0xf]  ;;  %v2034_v8 = vld [vmem:[%s3146_s3] ss:$0 sm:$0xff]  ;;  %s2513_s25 = smov 120   ;;  %s2514_s4 = smov 104  }
  0xa1   : > { %2086 = vmatpush3.bf16.msra.mxu0 %v2262_v1  ;;  %2094 = vmatpush3.bf16.msra.mxu1 %v2263_v2  ;;  %v2038_v9 = vld [vmem:[%s3148_s5] ss:$0 sm:$0xff]  ;;  %s2515_s19 = smov 112   ;;  %vm675_vm2 = vcmask 64512   ;;  %v2516_v23 = vmov 1983009808  }
  0xa2   : > { %2087 = vmatprep.subr.bf16.mxu0 %v2510_v0  ;;  %2095 = vmatprep.subr.bf16.mxu1 %v2510_v0  ;;  %676 = vst.msk [vmem:[#allocation5] sm:$0xff] %vm675_vm2, %v2510_v0  ;;  %677 = vst.msk [vmem:[#allocation5 + $0x8] sm:$0xff] %vm675_vm2, %v2510_v0  ;;  %v497_v24 = vunpack.c.l.s4 %v2516_v23  ;;  %v2517_v26 = vmov 1934713408   ;;  %v2838_v29 = vshrl.u32 %v499_v25, 7  ;;  %vm661_vm3 = vcmask 60416  }
  0xa3   : > { %2260 = vset.pattern.permute.xlu0 %v2512_v7  ;;  %2261 = vset.pattern.permute.xlu1 %v2512_v7  ;;  %678 = vst.msk [vmem:[#allocation5 + $0x10] sm:$0xff] %vm675_vm2, %v2510_v0  ;;  %679 = vst.msk [vmem:[#allocation5 + $0x18] sm:$0xff] %vm675_vm2, %v2510_v0  ;;  %v514_v27 = vunpack.c.l.s4 %v2517_v26  ;;  %vm666_vm4 = vcmask 7168   ;;  %s2519_s9 = smov 96   ;;  %vm1421_vm6 = vcmask 1043456   ;;  %s2520_s22 = smov 16  }
  0xa4   : > { %v498_v28 = vunpack.c.0.s8 %v497_v24  ;;  %671 = vst.msk [vmem:[#allocation4] sm:$0xff] %vm666_vm4, %v2510_v0  ;;  %672 = vst.msk [vmem:[#allocation4 + $0x8] sm:$0xff] %vm666_vm4, %v2510_v0  ;;  %s2521_s24 = smov 8   ;;  %s2522_s17 = smov 24   ;;  %vm1804_vm7 = vcmask 130048   ;;  %vm1806_vm8 = vcmask 195584  }
  0xa5   : > { %2088 = vmatpush3.bf16.msra.mxu0 %v2264_v3  ;;  %2096 = vmatpush3.bf16.msra.mxu1 %v2265_v4  ;;  %v515_v32 = vunpack.c.0.s8 %v514_v27  ;;  %673 = vst.msk [vmem:[#allocation4 + $0x10] sm:$0xff] %vm666_vm4, %v2510_v0  ;;  %674 = vst.msk [vmem:[#allocation4 + $0x18] sm:$0xff] %vm666_vm4, %v2510_v0  ;;  %s2033_s14 = sshll.u32 %s2779_s2, 3  ;;  %s2057_s11 = sshll.u32 %s2494_s30, 7 }
  0xa6   : > { %2101 = vmatprep.subr.bf16.mxu0 %v2510_v0  ;;  %2107 = vmatprep.subr.bf16.mxu1 %v2510_v0  ;;  %v2843_v33 = vsub.s32 %v498_v28, %v2838_v29  ;;  %s413_s13 = scalar_lea.vmem [#allocation14], %s2033_s14  ;;  %s1878_s30 = scalar_lea.sflag [#allocation8], %s2779_s2 }
  0xa7   : > { %v2847_v36 = vsub.s32 %v515_v32, %v2838_v29  ;;  %s1892_s21 = sshll.u32 %s413_s13, 4  ;;  %p3182_p6 = scmp.ne.s32.totalorder %s3173_s18, 0  ;;  %s3095_s21 = int_to_ptr.vmem [resolvable:$true] %s1892_s21 }
  0xa8   : > { %2090 = vmatmul.mubr.msk.bf16.vlgmr.msra.gmra.mrb[0].mxu0 %vm443_vm1, %v419_v5  ;;  %2098 = vmatmul.mubr.msk.bf16.vlgmr.msra.gmra.mrb[0].mxu1 %vm443_vm1, %v687_v6 }
  0xa9   : > { %2103 = vmatprep.mubr.msk.bf16.mxu0 %vm2511_vm0, %v2510_v0  ;;  %2109 = vmatprep.mubr.msk.bf16.mxu1 %vm2511_vm0, %v2510_v0 }
 0x17b   : > { %v481_v10 = vpop.f32.mrb[0].mxu0  ;;  %v749_v12 = vpop.f32.mrb[0].mxu1 }
 0x17c   : > { %v482_v11 = vadd.f32 %v2034_v8, %v481_v10  ;;  %v2091_v13 = vpop.f32.mrb[1].mxu0  ;;  %v750_v14 = vadd.f32 %v2038_v9, %v749_v12  ;;  %v2099_v15 = vpop.f32.mrb[1].mxu1 }
 0x17d   : > { %v484_v16 = vpop.f32.mrb[2].mxu0  ;;  %v752_v18 = vpop.f32.mrb[2].mxu1 }
 0x17e   : > { %v487_v17 = vmul.f32 0.35355338, %v482_v11  ;;  %v2092_v19 = vpop.f32.mrb[3].mxu0  ;;  %v2824_v20 = vpack.c.bf16 %v750_v14, %v750_v14  ;;  %v2100_v21 = vpop.f32.mrb[3].mxu1 }
 0x180   : > { %v488_v22 = vpack.c.bf16 %v487_v17, %v487_v17  ;;  %757 = vrot.lane.b32.xlu1 %v2824_v20, %s2513_s25  ;;  %v769_v49 = vrot.slane %v2824_v20, %v2843_v33 }
 0x182   : > { %490 = vrot.lane.b32.xlu0 %v488_v22, %s2513_s25  ;;  %v502_v39 = vrot.slane %v488_v22, %v2843_v33 }
 0x184   : > { %494 = vrot.lane.b32.xlu1 %v488_v22, %s2514_s4 }
 0x186   : > { %492 = vrot.lane.b32.xlu0 %v488_v22, %s2515_s19 }
 0x188   : > { %761 = vrot.lane.b32.xlu1 %v2824_v20, %s2514_s4  ;;  %s3093_s4 = scalar_lea.hbm %s3151_s8, %s2057_s11 }
 0x18a   : > { %759 = vrot.lane.b32.xlu0 %v2824_v20, %s2515_s19  ;;  %s2408_s19 = scalar_lea.vmem %s3095_s21, 128 }
 0x18b   : > { %p2409_p1 = scmp.ne.s32.totalorder %s3095_s21, %s2408_s19 }
 0x18d   : > { %p2410_p10 = pnand %p2409_p1, %p3182_p6 }
 0x18f   : > { %p2411_p3 = pneg %p2410_p10 }
 0x1f2   : > { %v2840_v30 = vpop.permute.xlu1 %757 }
 0x1f3   : > { %v803_v46 = vrot.slane %v2840_v30, %v2843_v33 }
 0x1f4   : > { %v491_v31 = vpop.permute.xlu0 %490 }
 0x1f5   : > { %v536_v35 = vrot.slane %v491_v31, %v2843_v33 }
 0x1f6   : > { %v495_v34 = vpop.permute.xlu1 %494 }
 0x1f7   : > { %v544_v37 = vrot.slane %v495_v34, %v2843_v33 }
 0x1f8   : > { %v493_v38 = vpop.permute.xlu0 %492 }
 0x1f9   : > { %v510_v40 = vrot.slane %v493_v38, %v2843_v33  ;;  %v545_v41 = vcombine.low %v536_v35, %v544_v37  ;;  %v546_v42 = vcombine.high %v536_v35, %v544_v37 }
 0x1fa   : > { %v2852_v45 = vpop.permute.xlu1 %761 }
 0x1fb   : > { %v511_v43 = vcombine.low %v502_v39, %v510_v40  ;;  %v512_v44 = vcombine.high %v502_v39, %v510_v40  ;;  %v553_v47 = vrot.slane %v545_v41, %v2847_v36  ;;  %v560_v48 = vrot.slane %v546_v42, %v2847_v36 }
 0x1fc   : > { %v2860_v50 = vpop.permute.xlu0 %759  ;;  %v811_v53 = vrot.slane %v2852_v45, %v2843_v33 }
 0x1fd   : > { %v519_v51 = vrot.slane %v511_v43, %v2847_v36  ;;  %v526_v52 = vrot.slane %v512_v44, %v2847_v36  ;;  %v777_v54 = vrot.slane %v2860_v50, %v2843_v33  ;;  %v561_v55 = vcombine.high %v553_v47, %v2512_v7 }
 0x1fe   : > { %v562_v56 = vcombine.high %v560_v48, %v2512_v7  ;;  %v568_v57 = vshrl.u32 %v553_v47, 16  ;;  %v584_v58 = vshrl.u32 %v560_v48, 16  ;;  %v812_v12 = vcombine.low %v803_v46, %v811_v53 }
 0x1ff   : > { %v527_v59 = vcombine.high %v519_v51, %v2512_v7  ;;  %v528_v60 = vcombine.high %v526_v52, %v2512_v7  ;;  %v565_v61 = vpack.i.b16 %v553_v47, %v519_v51  ;;  %v567_v62 = vshrl.u32 %v519_v51, 16 }
 0x200   : > { %v576_v63 = vshrl.u32 %v561_v55, 16  ;;  %v592_v1 = vshrl.u32 %v562_v56, 16  ;;  %v581_v2 = vpack.i.b16 %v560_v48, %v526_v52  ;;  %v583_v3 = vshrl.u32 %v526_v52, 16 }
 0x201   : > { %v569_v4 = vpack.i.b16 %v568_v57, %v567_v62  ;;  %v573_v5 = vpack.i.b16 %v561_v55, %v527_v59  ;;  %v575_v6 = vshrl.u32 %v527_v59, 16  ;;  %v589_v8 = vpack.i.b16 %v562_v56, %v528_v60 }
 0x202   : > { %v585_v9 = vpack.i.b16 %v584_v58, %v583_v3  ;;  %v591_v10 = vshrl.u32 %v528_v60, 16  ;;  %v595_v11 = vcombine.low %v565_v61, %v581_v2  ;;  %v813_v15 = vcombine.high %v803_v46, %v811_v53 }
 0x203   : > { %v577_v13 = vpack.i.b16 %v576_v63, %v575_v6  ;;  %v603_v14 = vcombine.low %v573_v5, %v589_v8  ;;  %v778_v16 = vcombine.low %v769_v49, %v777_v54  ;;  %v820_v21 = vrot.slane %v812_v12, %v2847_v36 }
 0x204   : > { %v593_v17 = vpack.i.b16 %v592_v1, %v591_v10  ;;  %v602_v18 = vrot.slane %v595_v11, %v2843_v33  ;;  %v620_v19 = vcombine.low %v569_v4, %v585_v9  ;;  %v827_v23 = vrot.slane %v813_v15, %v2847_v36 }
 0x205   : > { %v610_v22 = vrot.slane %v603_v14, %v2843_v33  ;;  %v779_v24 = vcombine.high %v769_v49, %v777_v54  ;;  %v786_v26 = vrot.slane %v778_v16, %v2847_v36  ;;  %v828_v31 = vcombine.high %v820_v21, %v2512_v7 }
 0x206   : > { %v627_v27 = vrot.slane %v620_v19, %v2843_v33  ;;  %v628_v28 = vcombine.low %v577_v13, %v593_v17  ;;  %v829_v34 = vcombine.high %v827_v23, %v2512_v7  ;;  %v835_v35 = vshrl.u32 %v820_v21, 16 }
 0x207   : > { %v611_v32 = vcombine.low %v602_v18, %v610_v22  ;;  %v793_v37 = vrot.slane %v779_v24, %v2847_v36  ;;  %v843_v39 = vshrl.u32 %v828_v31, 16  ;;  %v851_v40 = vshrl.u32 %v827_v23, 16 }
 0x208   : > { %v635_v38 = vrot.slane %v628_v28, %v2843_v33  ;;  %v794_v41 = vcombine.high %v786_v26, %v2512_v7  ;;  %v832_v44 = vpack.i.b16 %v820_v21, %v786_v26  ;;  %v834_v46 = vshrl.u32 %v786_v26, 16 }
 0x209   : > { %v618_v42 = vrot.slane %v611_v32, %v2847_v36  ;;  %v795_v43 = vcombine.high %v793_v37, %v2512_v7  ;;  %v859_v48 = vshrl.u32 %v829_v34, 16  ;;  %v848_v51 = vpack.i.b16 %v827_v23, %v793_v37 }
 0x20a   : > { %v636_v47 = vcombine.low %v627_v27, %v635_v38  ;;  %v842_v49 = vshrl.u32 %v794_v41, 16  ;;  %v836_v53 = vpack.i.b16 %v835_v35, %v834_v46  ;;  %v840_v54 = vpack.i.b16 %v828_v31, %v794_v41 }
 0x20b   : > { %v619_v52 = vcombine.high %v618_v42, %v2512_v7  ;;  %v850_v55 = vshrl.u32 %v793_v37, 16  ;;  %v856_v58 = vpack.i.b16 %v829_v34, %v795_v43  ;;  %v858_v59 = vshrl.u32 %v795_v43, 16 }
 0x20c   : > { %v643_v56 = vrot.slane %v636_v47, %v2847_v36  ;;  %v844_v57 = vpack.i.b16 %v843_v39, %v842_v49  ;;  %v649_v60 = vshrl.u32 %v618_v42, 16  ;;  %v862_v62 = vcombine.low %v832_v44, %v848_v51 }
 0x20d   : > { %v852_v61 = vpack.i.b16 %v851_v40, %v850_v55  ;;  %v860_v3 = vpack.i.b16 %v859_v48, %v858_v59  ;;  %v657_v4 = vshrl.u32 %v619_v52, 16  ;;  %v870_v5 = vcombine.low %v840_v54, %v856_v58 }
 0x20e   : > { %v644_v63 = vcombine.high %v643_v56, %v2512_v7  ;;  %v647_v1 = vpack.i.b16 %v643_v56, %v618_v42  ;;  %v650_v2 = vshrl.u32 %v643_v56, 16  ;;  %v869_v12 = vrot.slane %v862_v62, %v2843_v33 }
 0x20f   : > { %v887_v6 = vcombine.low %v836_v53, %v852_v61  ;;  %v895_v11 = vcombine.low %v844_v57, %v860_v3  ;;  %v877_v13 = vrot.slane %v870_v5, %v2843_v33  ;;  %v2518_v46 = vmov -1e+30  }
 0x210   : > { %v651_v8 = vpack.i.b16 %v650_v2, %v649_v60  ;;  %v655_v9 = vpack.i.b16 %v644_v63, %v619_v52  ;;  %v658_v10 = vshrl.u32 %v644_v63, 16  ;;  %662 = vst.msk [vmem:[#allocation2] sm:$0xf] %vm661_vm3, %v647_v1  ;;  %v1103_v47 = vand.u32 127, %v499_v25 }
 0x211   : > { %v894_v15 = vrot.slane %v887_v6, %v2843_v33  ;;  %v902_v16 = vrot.slane %v895_v11, %v2843_v33  ;;  %v878_v17 = vcombine.low %v869_v12, %v877_v13  ;;  %667 = vst.msk [vmem:[#allocation3] sm:$0xff] %vm666_vm4, %v2518_v46  ;;  %668 = vst.msk [vmem:[#allocation3 + $0x8] sm:$0xff] %vm666_vm4, %v2518_v46 }
 0x212   : > { %v659_v14 = vpack.i.b16 %v658_v10, %v657_v4  ;;  %663 = vst.msk [vmem:[#allocation2 + $0x4] sm:$0xf] %vm661_vm3, %v651_v8  ;;  %664 = vst.msk [vmem:[#allocation2 + $0x8] sm:$0xf] %vm661_vm3, %v655_v9  ;;  %vm1106_vm5 = vcmp.gt.s32.totalorder %v1103_v47, %v2838_v29 }
 0x213   : > { %v903_v18 = vcombine.low %v894_v15, %v902_v16  ;;  %v885_v19 = vrot.slane %v878_v17, %v2847_v36  ;;  %669 = vst.msk [vmem:[#allocation3 + $0x10] sm:$0xff] %vm666_vm4, %v2518_v46  ;;  %670 = vst.msk [vmem:[#allocation3 + $0x18] sm:$0xff] %vm666_vm4, %v2518_v46  ;;  %v1107_v48 = vsel %vm1106_vm5, -1e+30, %v2510_v0 }
 0x214   : > { %665 = vst.msk [vmem:[#allocation2 + $0xc] sm:$0xf] %vm661_vm3, %v659_v14 }
 0x215   : > { %v910_v21 = vrot.slane %v903_v18, %v2847_v36  ;;  %v915_v23 = vshrl.u32 %v885_v19, 16  ;;  %v886_v31 = vcombine.high %v885_v19, %v2512_v7 }
 0x217   : > { %v914_v22 = vpack.i.b16 %v910_v21, %v885_v19  ;;  %v916_v24 = vshrl.u32 %v910_v21, 16  ;;  %v911_v26 = vcombine.high %v910_v21, %v2512_v7  ;;  %v921_v37 = vshrl.u32 %v886_v31, 16  ;;  %v1094_v39 = vld [vmem:[#allocation2] sm:$0xf] }
 0x218   : > { %v2955_v10 = vld [vmem:[#allocation3] sm:$0xff]  ;;  %v2957_v12 = vld [vmem:[#allocation3 + $0x8] sm:$0xff] }
 0x219   : > { %v1113_v27 = vsel %vm675_vm2, %v914_v22, 0  ;;  %v917_v28 = vpack.i.b16 %v916_v24, %v915_v23  ;;  %v922_v34 = vshrl.u32 %v911_v26, 16  ;;  %v920_v35 = vpack.i.b16 %v911_v26, %v886_v31  ;;  %v1095_v41 = vld [vmem:[#allocation2 + $0x4] sm:$0xf]  ;;  %v1096_v43 = vld [vmem:[#allocation2 + $0x8] sm:$0xf] }
 0x21a   : > { %2102 = vmatpush3.bf16.xpose.msra.mxu0 %v1113_v27  ;;  %v2980_v19 = vld [vmem:[#allocation3 + $0x18] sm:$0xff] }
 0x21b   : > { %v1159_v32 = vsel %vm675_vm2, %v917_v28, 0  ;;  %2113 = vmatprep.subr.bf16.mxu0 %v2510_v0  ;;  %v923_v38 = vpack.i.b16 %v922_v34, %v921_v37  ;;  %v1205_v40 = vsel %vm675_vm2, %v920_v35, 0  ;;  %v1097_v44 = vld [vmem:[#allocation2 + $0xc] sm:$0xf] }
 0x21c   : > { %2108 = vmatpush3.bf16.xpose.msra.mxu1 %v1159_v32 }
 0x21d   : > { %2119 = vmatprep.subr.bf16.mxu1 %v2510_v0  ;;  %v1251_v42 = vsel %vm675_vm2, %v923_v38, 0 }
 0x221   : > { %2104 = vmatmul.mubr.msk.bf16.vlgmr.msra.gmra.mrb[4].mxu0 %vm675_vm2, %v1094_v39 }
 0x222   : > { %2114 = vmatpush3.bf16.xpose.msra.mxu0 %v1205_v40  ;;  %2115 = vmatprep.mubr.msk.bf16.mxu0 %vm2511_vm0, %v2510_v0 }
 0x223   : > { %2110 = vmatmul.mubr.msk.bf16.vlgmr.msra.gmra.mrb[4].mxu1 %vm675_vm2, %v1095_v41  ;;  %2125 = vmatprep.subr.bf16.mxu0 %v2510_v0 }
 0x224   : > { %2120 = vmatpush3.bf16.xpose.msra.mxu1 %v1251_v42  ;;  %2121 = vmatprep.mubr.msk.bf16.mxu1 %vm2511_vm0, %v2510_v0 }
 0x225   : > { %2131 = vmatprep.subr.bf16.mxu1 %v2510_v0 }
 0x229   : > { %2116 = vmatmul.mubr.msk.bf16.vlgmr.msra.gmra.mrb[8].mxu0 %vm675_vm2, %v1096_v43 }
 0x22a   : > { %2127 = vmatprep.mubr.msk.bf16.mxu0 %vm2511_vm0, %v2510_v0 }
 0x22b   : > { %2122 = vmatmul.mubr.msk.bf16.vlgmr.msra.gmra.mrb[8].mxu1 %vm675_vm2, %v1097_v44 }
 0x22c   : > { %2133 = vmatprep.mubr.msk.bf16.mxu1 %vm2511_vm0, %v2510_v0 }
 0x2f4   : > { %v1149_v49 = vpop.f32.mrb[4].mxu0 }
 0x2f5   : > { %v2935_v51 = vadd.f32 %v1149_v49, %v1107_v48  ;;  %v2105_v52 = vpop.f32.mrb[5].mxu0 }
 0x2f6   : > { %v1152_v53 = vpop.f32.mrb[6].mxu0  ;;  %v1195_v54 = vpop.f32.mrb[4].mxu1 }
 0x2f7   : > { %v2937_v55 = vadd.f32 %v1195_v54, %v1107_v48  ;;  %v2106_v56 = vpop.f32.mrb[7].mxu0  ;;  %v2111_v57 = vpop.f32.mrb[5].mxu1  ;;  %v1297_v58 = vsel %vm675_vm2, %v2935_v51, -inf }
 0x2f8   : > { %v1198_v59 = vpop.f32.mrb[6].mxu1  ;;  %1298 = vmax.xlane.f32.xlu0 %v1297_v58 }
 0x2f9   : > { %v2112_v25 = vpop.f32.mrb[7].mxu1  ;;  %v1300_v29 = vsel %vm675_vm2, %v2937_v55, -inf }
 0x2fa   : > { %1301 = vmax.xlane.f32.xlu1 %v1300_v29 }
 0x2fc   : > { %v1241_v60 = vpop.f32.mrb[8].mxu0 }
 0x2fd   : > { %v2943_v61 = vadd.f32 %v1241_v60, %v1107_v48  ;;  %v2117_v62 = vpop.f32.mrb[9].mxu0 }
 0x2fe   : > { %v1244_v63 = vpop.f32.mrb[10].mxu0  ;;  %v1287_v1 = vpop.f32.mrb[8].mxu1 }
 0x2ff   : > { %v2945_v2 = vadd.f32 %v1287_v1, %v1107_v48  ;;  %v2118_v3 = vpop.f32.mrb[11].mxu0  ;;  %v2123_v4 = vpop.f32.mrb[9].mxu1  ;;  %v1303_v5 = vsel %vm675_vm2, %v2943_v61, -inf }
 0x300   : > { %v1290_v6 = vpop.f32.mrb[10].mxu1  ;;  %1304 = vmax.xlane.f32.xlu0 %v1303_v5 }
 0x301   : > { %v2124_v8 = vpop.f32.mrb[11].mxu1  ;;  %v1306_v9 = vsel %vm675_vm2, %v2945_v2, -inf }
 0x304   : > { %1307 = vmax.xlane.f32.xlu0 %v1306_v9 }
 0x30b   : > { %924 = vrot.lane.b32.xlu1 %v2824_v20, %s2519_s9 }
 0x30f   : > { %928 = vrot.lane.b32.xlu1 %v2860_v50, %s2519_s9  ;;  %v2975_v50 = vld [vmem:[#allocation3 + $0x10] sm:$0xff] }
 0x313   : > { %930 = vrot.lane.b32.xlu1 %v2852_v45, %s2519_s9 }
 0x31a   : > { %926 = vrot.lane.b32.xlu0 %v2840_v30, %s2519_s9  ;;  %s2523_s9 = smov [#allocation14]  }
 0x31b   : > { %s2412_s20 = sshll.u32 %s2523_s9, 4  ;;  %s2413_s20 = int_to_ptr.vmem [resolvable:$false] %s2412_s20 }
 0x31c   : > { %s2414_s16 = scalar_lea.vmem %s2413_s20, 256  ;;  %p2415_p4 = scmp.lt.s32.totalorder %s3095_s21, %s2413_s20 }
 0x31d   : > { %p2416_p9 = scmp.lt.s32.totalorder %s2414_s16, %s2408_s19 }
 0x31f   : > { %p2417_p5 = por %p2416_p9, %p2415_p4 }
 0x321   : > { %p2418_p7 = pnand %p2417_p5, %p2411_p3 }
 0x385   : > { %v1299_v11 = vpop.xlane.xlu0 %1298 }
 0x386   : > { %v2960_v13 = vmax.f32 %v2955_v10, %v1299_v11 }
 0x387   : > { %v1302_v14 = vpop.xlane.xlu1 %1301 }
 0x388   : > { %v1313_v15 = vsub.f32 %v2955_v10, %v2960_v13  ;;  %1611 = vst.msk [vmem:[#allocation3] sm:$0xff] %vm666_vm4, %v2960_v13  ;;  %v2967_v20 = vmax.f32 %v2957_v12, %v1302_v14  ;;  %1327 = vperm.xlu0 %2260, %v2960_v13   ;;  %v1357_v10 = vld [vmem:[#allocation4] sm:$0xff]  ;;  %v1358_v13 = vld [vmem:[#allocation4 + $0x8] sm:$0xff] }
 0x38a   : > { %v1314_v30 = vsub.f32 %v2957_v12, %v2967_v20  ;;  %1612 = vst.msk [vmem:[#allocation3 + $0x8] sm:$0xff] %vm666_vm4, %v2967_v20  ;;  %1332 = vperm.xlu1 %2261, %v2967_v20  }
 0x38b   : > { %v925_v45 = vpop.permute.xlu1 %924 }
 0x38c   : > { %v939_v21 = vrot.slane %v925_v45, %v2843_v33 }
 0x38d   : > { %v1305_v16 = vpop.xlane.xlu0 %1304 }
 0x38e   : > { %v2978_v17 = vmax.f32 %v2975_v50, %v1305_v16 }
 0x38f   : > { %v929_v18 = vpop.permute.xlu1 %928 }
 0x390   : > { %v1315_v22 = vsub.f32 %v2975_v50, %v2978_v17  ;;  %1613 = vst.msk [vmem:[#allocation3 + $0x10] sm:$0xff] %vm666_vm4, %v2978_v17  ;;  %v947_v23 = vrot.slane %v929_v18, %v2843_v33  ;;  %1337 = vperm.xlu1 %2261, %v2978_v17  }
 0x391   : > { %v1308_v24 = vpop.xlane.xlu0 %1307 }
 0x392   : > { %v948_v26 = vcombine.low %v939_v21, %v947_v23  ;;  %v2990_v27 = vmax.f32 %v2980_v19, %v1308_v24  ;;  %v949_v28 = vcombine.high %v939_v21, %v947_v23 }
 0x393   : > { %v931_v32 = vpop.permute.xlu1 %930 }
 0x394   : > { %v1316_v31 = vsub.f32 %v2980_v19, %v2990_v27  ;;  %1614 = vst.msk [vmem:[#allocation3 + $0x18] sm:$0xff] %vm666_vm4, %v2990_v27  ;;  %1342 = vperm.xlu0 %2260, %v2990_v27   ;;  %v956_v35 = vrot.slane %v948_v26, %v2847_v36  ;;  %v981_v37 = vrot.slane %v931_v32, %v2843_v33  ;;  %v1359_v27 = vld [vmem:[#allocation4 + $0x10] sm:$0xff] }
 0x395   : > { %v927_v34 = vpop.permute.xlu0 %926  ;;  %v963_v39 = vrot.slane %v949_v28, %v2847_v36 }
 0x396   : > { %v973_v38 = vrot.slane %v927_v34, %v2843_v33  ;;  %v964_v42 = vcombine.high %v956_v35, %v2512_v7  ;;  %v1004_v47 = vshrl.u32 %v956_v35, 16 }
 0x397   : > { %v965_v46 = vcombine.high %v963_v39, %v2512_v7  ;;  %v1020_v56 = vshrl.u32 %v963_v39, 16 }
 0x398   : > { %v982_v40 = vcombine.low %v973_v38, %v981_v37  ;;  %v983_v41 = vcombine.high %v973_v38, %v981_v37  ;;  %v1012_v54 = vshrl.u32 %v964_v42, 16 }
 0x399   : > { %v1028_v62 = vshrl.u32 %v965_v46, 16 }
 0x39a   : > { %v990_v43 = vrot.slane %v982_v40, %v2847_v36  ;;  %v997_v44 = vrot.slane %v983_v41, %v2847_v36 }
 0x39c   : > { %v998_v48 = vcombine.high %v990_v43, %v2512_v7  ;;  %v999_v49 = vcombine.high %v997_v44, %v2512_v7  ;;  %v1002_v52 = vpack.i.b16 %v990_v43, %v956_v35  ;;  %v1005_v53 = vshrl.u32 %v990_v43, 16 }
 0x39d   : > { %v1018_v57 = vpack.i.b16 %v997_v44, %v963_v39  ;;  %v1021_v58 = vshrl.u32 %v997_v44, 16 }
 0x39e   : > { %v1006_v59 = vpack.i.b16 %v1005_v53, %v1004_v47  ;;  %v1010_v25 = vpack.i.b16 %v998_v48, %v964_v42  ;;  %v1013_v29 = vshrl.u32 %v998_v48, 16  ;;  %v1026_v60 = vpack.i.b16 %v999_v49, %v965_v46 }
 0x39f   : > { %v1022_v63 = vpack.i.b16 %v1021_v58, %v1020_v56  ;;  %v1029_v1 = vshrl.u32 %v999_v49, 16  ;;  %v1032_v3 = vcombine.low %v1002_v52, %v1018_v57 }
 0x3a0   : > { %v1014_v4 = vpack.i.b16 %v1013_v29, %v1012_v54  ;;  %v1040_v5 = vcombine.low %v1010_v25, %v1026_v60 }
 0x3a1   : > { %v1030_v6 = vpack.i.b16 %v1029_v1, %v1028_v62  ;;  %v1057_v8 = vcombine.low %v1006_v59, %v1022_v63  ;;  %v1039_v9 = vrot.slane %v1032_v3, %v2843_v33 }
 0x3a2   : > { %v1047_v11 = vrot.slane %v1040_v5, %v2843_v33 }
 0x3a3   : > { %v1065_v14 = vcombine.low %v1014_v4, %v1030_v6  ;;  %v1064_v16 = vrot.slane %v1057_v8, %v2843_v33  ;;  %v1319_v6 = vmul.f32 1.442695, %v1314_v30  ;;  %v1317_v8 = vmul.f32 1.442695, %v1313_v15 }
 0x3a4   : > { %v1048_v45 = vcombine.low %v1039_v9, %v1047_v11  ;;  %v1321_v9 = vmul.f32 1.442695, %v1315_v22  ;;  %v1323_v11 = vmul.f32 1.442695, %v1316_v31 }
 0x3a5   : > { %v1072_v18 = vrot.slane %v1065_v14, %v2843_v33 }
 0x3a6   : > { %v1055_v21 = vrot.slane %v1048_v45, %v2847_v36 }
 0x3a7   : > { %v1073_v23 = vcombine.low %v1064_v16, %v1072_v18  ;;  %v1360_v18 = vld [vmem:[#allocation4 + $0x18] sm:$0xff] }
 0x3a8   : > { %v1056_v24 = vcombine.high %v1055_v21, %v2512_v7  ;;  %v1085_v32 = vshrl.u32 %v1055_v21, 16 }
 0x3a9   : > { %v1080_v26 = vrot.slane %v1073_v23, %v2847_v36 }
 0x3aa   : > { %v1091_v37 = vshrl.u32 %v1056_v24, 16 }
 0x3ab   : > { %v1084_v28 = vpack.i.b16 %v1080_v26, %v1055_v21  ;;  %v1086_v34 = vshrl.u32 %v1080_v26, 16  ;;  %v1081_v35 = vcombine.high %v1080_v26, %v2512_v7 }
 0x3ad   : > { %v1423_v38 = vsel %vm1421_vm6, %v1084_v28, 0  ;;  %v1087_v39 = vpack.i.b16 %v1086_v34, %v1085_v32  ;;  %v1090_v40 = vpack.i.b16 %v1081_v35, %v1056_v24  ;;  %v1092_v41 = vshrl.u32 %v1081_v35, 16 }
 0x3ae   : > { %2126 = vmatpush3.bf16.msra.mxu0 %v1423_v38 }
 0x3af   : > { %v1469_v42 = vsel %vm1421_vm6, %v1087_v39, 0  ;;  %2137 = vmatprep.subr.bf16.mxu0 %v2510_v0  ;;  %v1515_v43 = vsel %vm1421_vm6, %v1090_v40, 0  ;;  %v1093_v44 = vpack.i.b16 %v1092_v41, %v1091_v37  ;;  %v1386_v41 = vld [vmem:[#allocation5] sm:$0xff] }
 0x3b0   : > { %2132 = vmatpush3.bf16.msra.mxu1 %v1469_v42 }
 0x3b1   : > { %2143 = vmatprep.subr.bf16.mxu1 %v2510_v0  ;;  %v1561_v46 = vsel %vm1421_vm6, %v1093_v44, 0 }
 0x407   : > { %v1328_v7 = vpop.permute.xlu0 %1327 }
 0x408   : > { %v1345_v47 = vsub.f32 %v2935_v51, %v1328_v7 }
 0x409   : > { %v1333_v48 = vpop.permute.xlu1 %1332 }
 0x40a   : > { %v1349_v49 = vmul.f32 1.442695, %v1345_v47  ;;  %v1346_v52 = vsub.f32 %v2937_v55, %v1333_v48 }
 0x40c   : > { %2268 = vpow2.f32 %v1349_v49  ;;  %v1351_v53 = vmul.f32 1.442695, %v1346_v52 }
 0x40e   : > { %2270 = vpow2.f32 %v1351_v53 }
 0x40f   : > { %v1338_v54 = vpop.permute.xlu1 %1337 }
 0x410   : > { %v1347_v56 = vsub.f32 %v2943_v61, %v1338_v54 }
 0x412   : > { %v1353_v57 = vmul.f32 1.442695, %v1347_v56 }
 0x413   : > { %v1343_v58 = vpop.permute.xlu0 %1342 }
 0x414   : > { %2272 = vpow2.f32 %v1353_v57  ;;  %v1348_v59 = vsub.f32 %v2945_v2, %v1343_v58  ;;  %v1388_v58 = vld [vmem:[#allocation5 + $0x10] sm:$0xff] }
 0x416   : > { %v2269_v25 = vpop.eup %2268  ;;  %v1355_v29 = vmul.f32 1.442695, %v1348_v59 }
 0x417   : > { %v1365_v60 = vsel %vm675_vm2, %v2269_v25, 0.0  ;;  %v1414_v51 = vpack.c.bf16 %v2269_v25, %v2269_v25 }
 0x418   : > { %v2271_v62 = vpop.eup %2270  ;;  %2274 = vpow2.f32 %v1355_v29  ;;  %1366 = vadd.xlane.f32.xlu1 %v1365_v60 }
 0x419   : > { %2128 = vmatmul.mubr.msk.bf16.vlgmr.msra.gmra.mrb[12].mxu0 %vm675_vm2, %v1414_v51  ;;  %v1368_v55 = vsel %vm675_vm2, %v2271_v62, 0.0  ;;  %v1415_v63 = vpack.c.bf16 %v2271_v62, %v2271_v62  ;;  %2276 = vpow2.f32 %v1319_v6  ;;  %v1389_v51 = vld [vmem:[#allocation5 + $0x18] sm:$0xff] }
 0x41a   : > { %2138 = vmatpush3.bf16.msra.mxu0 %v1515_v43  ;;  %1369 = vadd.xlane.f32.xlu0 %v1368_v55  ;;  %2278 = vpow2.f32 %v1317_v8  ;;  %v1387_v43 = vld [vmem:[#allocation5 + $0x8] sm:$0xff] }
 0x41b   : > { %2134 = vmatmul.mubr.msk.bf16.vlgmr.msra.gmra.mrb[12].mxu1 %vm675_vm2, %v1415_v63  ;;  %2139 = vmatprep.mubr.msk.bf16.mxu0 %vm2511_vm0, %v2510_v0  ;;  %2280 = vpow2.f32 %v1321_v9 }
 0x41c   : > { %2144 = vmatpush3.bf16.msra.mxu1 %v1561_v46  ;;  %2145 = vmatprep.mubr.msk.bf16.mxu1 %vm2511_vm0, %v2510_v0  ;;  %2282 = vpow2.f32 %v1323_v11 }
 0x41d   : > { %2149 = vmatprep.subr.bf16.mxu0 %v2510_v0 }
 0x41e   : > { %v2273_v61 = vpop.eup %2272 }
 0x41f   : > { %v1371_v2 = vsel %vm675_vm2, %v2273_v61, 0.0  ;;  %v1416_v1 = vpack.c.bf16 %v2273_v61, %v2273_v61 }
 0x420   : > { %1372 = vadd.xlane.f32.xlu0 %v1371_v2 }
 0x421   : > { %2140 = vmatmul.mubr.msk.bf16.vlgmr.msra.gmra.mrb[16].mxu0 %vm675_vm2, %v1416_v1 }
 0x422   : > { %v2275_v3 = vpop.eup %2274  ;;  %2153 = vmatprep.mubr.msk.bf16.mxu0 %vm2511_vm0, %v2510_v0 }
 0x423   : > { %v1374_v4 = vsel %vm675_vm2, %v2275_v3, 0.0  ;;  %v1417_v5 = vpack.c.bf16 %v2275_v3, %v2275_v3  ;;  %v2277_v14 = vpop.eup %2276 }
 0x424   : > { %1375 = vadd.xlane.f32.xlu1 %v1374_v4  ;;  %v2279_v45 = vpop.eup %2278  ;;  %v1362_v17 = vmul.f32 %v2277_v14, %v1358_v13 }
 0x425   : > { %2146 = vmatmul.mubr.msk.bf16.vlgmr.msra.gmra.mrb[16].mxu1 %vm675_vm2, %v1417_v5  ;;  %v2281_v12 = vpop.eup %2280  ;;  %v1361_v15 = vmul.f32 %v2279_v45, %v1357_v10 }
 0x426   : > { %v2283_v20 = vpop.eup %2282  ;;  %v1363_v31 = vmul.f32 %v2281_v12, %v1359_v27 }
 0x427   : > { %v1364_v24 = vmul.f32 %v2283_v20, %v1360_v18 }
 0x435   : > { %1397 = vperm.xlu1 %2261, %v2277_v14  }
 0x436   : > { %1392 = vperm.xlu0 %2260, %v2279_v45  }
 0x439   : > { %1402 = vperm.xlu1 %2261, %v2281_v12  }
 0x43a   : > { %1407 = vperm.xlu0 %2260, %v2283_v20  }
 0x4a5   : > { %v1367_v30 = vpop.xlane.xlu1 %1366 }
 0x4a6   : > { %v1377_v50 = vadd.f32 %v1367_v30, %v1361_v15 }
 0x4a7   : > { %v1370_v22 = vpop.xlane.xlu0 %1369 }
 0x4a8   : > { %1382 = vst.msk [vmem:[#allocation4] sm:$0xff] %vm666_vm4, %v1377_v50  ;;  %v1378_v19 = vadd.f32 %v1370_v22, %v1362_v17 }
 0x4aa   : > { %1383 = vst.msk [vmem:[#allocation4 + $0x8] sm:$0xff] %vm666_vm4, %v1378_v19 }
 0x4ad   : > { %v1373_v16 = vpop.xlane.xlu0 %1372 }
 0x4ae   : > { %v1379_v21 = vadd.f32 %v1373_v16, %v1363_v31 }
 0x4af   : > { %v1622_v23 = vld [vmem:[#allocation4] sm:$0xff] }
 0x4b0   : > { %1384 = vst.msk [vmem:[#allocation4 + $0x10] sm:$0xff] %vm666_vm4, %v1379_v21  ;;  %2284 = vrcp.f32 %v1622_v23 }
 0x4b1   : > { %v1376_v26 = vpop.xlane.xlu1 %1375  ;;  %v1623_v28 = vld [vmem:[#allocation4 + $0x8] sm:$0xff] }
 0x4b2   : > { %v1380_v32 = vadd.f32 %v1376_v26, %v1364_v24  ;;  %2286 = vrcp.f32 %v1623_v28 }
 0x4b4   : > { %1385 = vst.msk [vmem:[#allocation4 + $0x18] sm:$0xff] %vm666_vm4, %v1380_v32 }
 0x4b5   : > { %v1393_v42 = vpop.permute.xlu0 %1392  ;;  %v1398_v44 = vpop.permute.xlu1 %1397 }
 0x4b6   : > { %v1410_v46 = vmul.f32 %v1393_v42, %v1386_v41  ;;  %v1411_v47 = vmul.f32 %v1398_v44, %v1387_v43 }
 0x4b7   : > { %v1624_v34 = vld [vmem:[#allocation4 + $0x10] sm:$0xff] }
 0x4b8   : > { %2288 = vrcp.f32 %v1624_v34 }
 0x4b9   : > { %v1403_v59 = vpop.permute.xlu1 %1402  ;;  %v1408_v62 = vpop.permute.xlu0 %1407 }
 0x4ba   : > { %v2285_v35 = vpop.eup %2284  ;;  %v1412_v60 = vmul.f32 %v1403_v59, %v1388_v58  ;;  %v1413_v1 = vmul.f32 %v1408_v62, %v1389_v51 }
 0x4bb   : > { %1632 = vperm.xlu1 %2261, %v2285_v35   ;;  %v1625_v37 = vld [vmem:[#allocation4 + $0x18] sm:$0xff]  ;;  %v2266_v35 = vld [vmem:[%s3149_s6] sm:$0xff]  }
 0x4bc   : > { %v2287_v38 = vpop.eup %2286  ;;  %2290 = vrcp.f32 %v1625_v37  ;;  %2150 = vmatpush3.bf16.msra.mxu0 %v2266_v35 }
 0x4bd   : > { %1637 = vperm.xlu0 %2260, %v2287_v38   ;;  %2151 = vmatprep.subr.bf16.mxu0 %v2510_v0 }
 0x4c2   : > { %v2289_v39 = vpop.eup %2288 }
 0x4c3   : > { %1642 = vperm.xlu1 %2261, %v2289_v39  }
 0x4c6   : > { %v2291_v40 = vpop.eup %2290 }
 0x4c7   : > { %1647 = vperm.xlu0 %2260, %v2291_v40  }
 0x4ec   : > { %v1459_v7 = vpop.f32.mrb[12].mxu0 }
 0x4ed   : > { %v1603_v48 = vadd.f32 %v1459_v7, %v1410_v46  ;;  %v2129_v49 = vpop.f32.mrb[13].mxu0  ;;  %v2267_v46 = vld [vmem:[%s3149_s6 + $0x8] sm:$0xff]  }
 0x4ee   : > { %v1462_v52 = vpop.f32.mrb[14].mxu0  ;;  %v1505_v53 = vpop.f32.mrb[12].mxu1  ;;  %2152 = vmatpush3.bf16.msra.mxu0 %v2267_v46 }
 0x4ef   : > { %1607 = vst.msk [vmem:[#allocation5] sm:$0xff] %vm675_vm2, %v1603_v48  ;;  %v1604_v54 = vadd.f32 %v1505_v53, %v1411_v47  ;;  %v2130_v56 = vpop.f32.mrb[15].mxu0  ;;  %v2135_v57 = vpop.f32.mrb[13].mxu1 }
 0x4f0   : > { %v1508_v25 = vpop.f32.mrb[14].mxu1 }
 0x4f1   : > { %1608 = vst.msk [vmem:[#allocation5 + $0x8] sm:$0xff] %vm675_vm2, %v1604_v54  ;;  %v2136_v29 = vpop.f32.mrb[15].mxu1 }
 0x4f4   : > { %v1551_v55 = vpop.f32.mrb[16].mxu0 }
 0x4f5   : > { %v1605_v63 = vadd.f32 %v1551_v55, %v1412_v60  ;;  %v2141_v61 = vpop.f32.mrb[17].mxu0 }
 0x4f6   : > { %v1554_v2 = vpop.f32.mrb[18].mxu0  ;;  %v1618_v10 = vld [vmem:[#allocation5] sm:$0xff] }
 0x4f7   : > { %1609 = vst.msk [vmem:[#allocation5 + $0x10] sm:$0xff] %vm675_vm2, %v1605_v63  ;;  %v2142_v3 = vpop.f32.mrb[19].mxu0 }
 0x4f8   : > { %v1597_v4 = vpop.f32.mrb[16].mxu1  ;;  %v1619_v15 = vld [vmem:[#allocation5 + $0x8] sm:$0xff] }
 0x4f9   : > { %v1606_v5 = vadd.f32 %v1597_v4, %v1413_v1  ;;  %v2147_v6 = vpop.f32.mrb[17].mxu1  ;;  %v2052_v1 = vld [vmem:[%s3150_s7] ss:$0 sm:$0xff] }
 0x4fa   : > { %v1600_v8 = vpop.f32.mrb[18].mxu1 }
 0x4fb   : > { %1610 = vst.msk [vmem:[#allocation5 + $0x18] sm:$0xff] %vm675_vm2, %v1606_v5  ;;  %v2148_v9 = vpop.f32.mrb[19].mxu1 }
 0x4fe   : > { %v1620_v12 = vld [vmem:[#allocation5 + $0x10] sm:$0xff] }
 0x502   : > { %v1621_v30 = vld [vmem:[#allocation5 + $0x18] sm:$0xff] }
 0x53a   : > { %v1633_v11 = vpop.permute.xlu1 %1632 }
 0x53b   : > { %v1650_v13 = vmul.f32 %v1633_v11, %v1618_v10 }
 0x53c   : > { %v1638_v14 = vpop.permute.xlu0 %1637 }
 0x53d   : > { %v1651_v17 = vmul.f32 %v1638_v14, %v1619_v15 }
 0x542   : > { %v1643_v45 = vpop.permute.xlu1 %1642 }
 0x543   : > { %v1652_v20 = vmul.f32 %v1643_v45, %v1620_v12 }
 0x545   : > { %v1654_v22 = vcombine.low %v1650_v13, %v1652_v20  ;;  %v1655_v19 = vcombine.high %v1650_v13, %v1652_v20 }
 0x546   : > { %v1648_v50 = vpop.permute.xlu0 %1647 }
 0x547   : > { %v1653_v27 = vmul.f32 %v1648_v50, %v1621_v30  ;;  %v1662_v18 = vrot.slane %v1654_v22, %v2843_v33  ;;  %v1669_v21 = vrot.slane %v1655_v19, %v2843_v33 }
 0x549   : > { %v1670_v31 = vcombine.low %v1651_v17, %v1653_v27  ;;  %v1671_v16 = vcombine.high %v1651_v17, %v1653_v27 }
 0x54b   : > { %v1678_v23 = vrot.slane %v1670_v31, %v2843_v33  ;;  %v1685_v24 = vrot.slane %v1671_v16, %v2843_v33 }
 0x54d   : > { %v1686_v26 = vcombine.low %v1662_v18, %v1678_v23  ;;  %v1687_v28 = vcombine.high %v1662_v18, %v1678_v23  ;;  %v1702_v32 = vcombine.low %v1669_v21, %v1685_v24  ;;  %v1703_v34 = vcombine.high %v1669_v21, %v1685_v24 }
 0x54f   : > { %v1694_v37 = vrot.slane %v1686_v26, %v2847_v36  ;;  %v1701_v38 = vrot.slane %v1687_v28, %v2847_v36  ;;  %v1710_v39 = vrot.slane %v1702_v32, %v2847_v36  ;;  %v1717_v40 = vrot.slane %v1703_v34, %v2847_v36 }
 0x551   : > { %v1722_v41 = vcombine.low %v1694_v37, %v1701_v38  ;;  %v2050_v42 = vcombine.high %v1694_v37, %v1701_v38  ;;  %v1738_v43 = vcombine.low %v1710_v39, %v1717_v40  ;;  %v2051_v44 = vcombine.high %v1710_v39, %v1717_v40 }
 0x553   : > { %v1729_v7 = vrot.slane %v1722_v41, %v2843_v33  ;;  %v1737_v47 = vrot.slane %v2050_v42, %v2843_v33  ;;  %v1745_v48 = vrot.slane %v1738_v43, %v2843_v33  ;;  %v1753_v49 = vrot.slane %v2051_v44, %v2843_v33 }
 0x555   : > { %v1755_v52 = vcombine.high %v1729_v7, %v1737_v47  ;;  %v1771_v53 = vcombine.high %v1745_v48, %v1753_v49  ;;  %v1754_v54 = vcombine.low %v1729_v7, %v1737_v47  ;;  %v1770_v56 = vcombine.low %v1745_v48, %v1753_v49 }
 0x557   : > { %v1769_v57 = vrot.slane %v1755_v52, %v2847_v36  ;;  %v1785_v0 = vrot.slane %v1771_v53, %v2847_v36  ;;  %v1762_v58 = vrot.slane %v1754_v54, %v2847_v36  ;;  %v1778_v59 = vrot.slane %v1770_v56, %v2847_v36 }
 0x559   : > { %v1788_v25 = vcombine.low %v1769_v57, %v1785_v0  ;;  %v1787_v29 = vcombine.high %v1762_v58, %v1778_v59  ;;  %v1786_v60 = vcombine.low %v1762_v58, %v1778_v59  ;;  %v1789_v33 = vcombine.high %v1769_v57, %v1785_v0 }
 0x55b   : > { %1795 = vrot.lane.b32.xlu0 %v1788_v25, %s2520_s22  ;;  %1791 = vrot.lane.b32.xlu1 %v1787_v29, %s2521_s24 }
 0x55f   : > { %1799 = vrot.lane.b32.xlu1 %v1789_v33, %s2522_s17 }
 0x5cd   : > { %v1792_v51 = vpop.permute.xlu1 %1791  ;;  %v1796_v62 = vpop.permute.xlu0 %1795 }
 0x5ce   : > { %v1803_v55 = vsel %vm675_vm2, %v1786_v60, %v1792_v51 }
 0x5cf   : > { %v1805_v36 = vsel %vm1804_vm7, %v1803_v55, %v1796_v62 }
 0x5d1   : > { %v1800_v63 = vpop.permute.xlu1 %1799 }
 0x5d2   : > { %v1807_v61 = vsel %vm1806_vm8, %v1805_v36, %v1800_v63 }
 0x5d3   : > { %v1808_v2 = vpack.c.bf16 %v1807_v61, %v1807_v61 }
 0x5d5   : > { %2154 = vmatmul.mubr.msk.bf16.vlgmr.msra.gmra.mrb[20].mxu0 %vm443_vm1, %v1808_v2 }
 0x6a8   : > { %v1870_v3 = vpop.f32.mrb[20].mxu0 }
 0x6a9   : > { %v1871_v4 = vadd.f32 %v2052_v1, %v1870_v3  ;;  %v2155_v5 = vpop.f32.mrb[21].mxu0 }
 0x6aa   : > { %v1873_v6 = vpop.f32.mrb[22].mxu0 }
 0x6ab   : > { %v2156_v8 = vpop.f32.mrb[23].mxu0  ;;  %1876 = vst.msk [vmem:[%s413_s13] sm:$0xff] %vm443_vm1, %v1871_v4 }
 0x6ac   : > { %2421 = shalt.err (!%p2418_p7)
}
 0x6ad   : > { %s2422_s2 = scalar_lea.hbm %s3093_s4, 128  ;;  %s2426_s22 = scalar_lea.hbm %s3151_s8, 256 }
 0x6ae   : > { %p2423_p13 = scmp.ne.s32.totalorder %s3093_s4, %s2422_s2  ;;  %p2427_p11 = scmp.lt.u32.totalorder %s3093_s4, %s3151_s8 }
 0x6af   : > { %p2428_p12 = scmp.lt.u32.totalorder %s2426_s22, %s2422_s2  ;;  %p2430_p1 = scmp.lt.u32.totalorder %s2422_s2, %s3093_s4 }
 0x6b0   : > { %p2424_p2 = pnand %p2423_p13, %p3182_p6 }
 0x6b1   : > { %p2429_p0 = por %p2428_p12, %p2427_p11 }
 0x6b2   : > { %p2425_p8 = pneg %p2424_p2 }
 0x6b3   : > { %p2431_p10 = por %p2430_p1, %p2429_p0 }
 0x6b5   : > { %p2432_p3 = pnand %p2431_p10, %p2425_p8 }
 0x6b7   : > { %2435 = shalt.err (!%p2432_p3)
}
 0x6b8   : > { %2169 = dma.vmem_to_hbm [thread:$0]  (%p3182_p6), %s3095_s21, 128, %s3093_s4, %s1878_s30  }
 0x6b9 PF: > { %s3183_s14 = sld [smem:[#allocation20_spill]]  ;;  %s3184_s26 = sld [smem:[#allocation22_spill]] }
 0x6ba   : > { %p3186_p9 = scmp.ge.s32.totalorder %s2502_s10, 2 }
 0x6bf   : > { %s1904_s15 = sand.u32 1, %s3183_s14   ;;  %p3185_p4 = scmp.ne.s32.totalorder %s3184_s26, 0 }
 0x6c0   : > { %s1905_s11 = scalar_lea.sflag [#allocation8], %s1904_s15 }
 0x6c1   : > { %p2186_p5 = pnand %p3186_p9, %p3185_p4 }
 0x6c3   : > { %2477 = dma.done.wait (!%p2186_p5), %s1905_s11, 128  }
 0x6c4   : > { %2479 = vsyncadd (!%p2186_p5), %s1905_s11, 4294967168  ;;  %s28_s10 = sadd.s32 1, %s2502_s10   ;;  %s3187_s18 = sld [smem:[#allocation24_spill]] }
 0x6c5   : > { %p25_p7 = scmp.ge.s32.totalorder %s28_s10, 4   ;;  %s3188_s30 = sld [smem:[#allocation21_spill]] }
 0x6c6   : > { %s3189_s9 = sld [smem:[#allocation23_spill]]  ;;  %s3190_s27 = smov %s2486_s28 }
 0x6c7   : > { %s3191_s28 = smov %s2490_s29  ;;  %27 = sbr.rel (!%p25_p7) target bundleno = 12 (0xc), region = 130 }
 0x6ca   : > { %s3192_s29 = smov %s3187_s18 }
 0x6ce   :  { %1910 = vsyncpa [#allocation7], 1 }
 0x6cf   :  { %1912 = vsyncpa [#allocation7 + $0x1], 1 }
 0x6d0   :  { %1913 = vsyncpa [#allocation10], 1 }
 0x6d1   :  { %1915 = vsyncpa [#allocation10 + $0x1], 1 }
 0x6d2   :  { %1916 = vsyncpa [#allocation13], 1 }
 0x6d3   :  { %1917 = vsyncpa [#allocation8], 1 }
 0x6d4   :  { %1919 = vsyncpa [#allocation8 + $0x1], 1 }

</bundles_post_ra>
